<compile_context>
chip_gen: v7x
topology: tpu7x:2x2x1
jax: 0.10.0
libtpu: 0.0.40
codegen_flags: <defaults>
</compile_context>

<pallas_src>
import numpy as np
import jax
import jax.numpy as jnp
from jax import lax
from jax.experimental import pallas as pl
from jax.experimental.pallas import tpu as pltpu

EPS = 1e-5


# ------------------------------ kernel ------------------------------------

def make_kernel(N, C, H, W, K):
    PAD = K // 2
    KK = K * K
    NC, HW = N * C, H * W
    D = 2 * C - 1
    inv_count = 1.0 / float(N * H * W)

    def kernel(x_ref, dw_ref, pwc_ref, gb_ref, mask_ref, o_ref):
        x = x_ref[...]                       # (NC, HW) f32, lane-dense
        msk = mask_ref[...]                  # (KK, HW) float boundary masks
        gbv = gb_ref[...]                    # (NC, 8): lanes 0-3 gamma, 4-7 beta

        def per_channel_total(col):
            # Sum over batch rows sharing a channel (rows r = n*C + c);
            # result replicated on every row.  Log-tree of sublane rolls when
            # N is a power of two, else a linear roll chain.
            if N & (N - 1) == 0:
                t = col
                step = 1
                while step < N:
                    t = t + pltpu.roll(t, shift=step * C, axis=0)
                    step *= 2
                return t
            tot = col
            for k in range(1, N):
                tot = tot + pltpu.roll(col, shift=(k * C) % NC, axis=0)
            return tot

        def depthwise(v, stage):
            # out[p] = sum_{dy,dx} w[c, dy, dx] * in[p + dy*W + dx] (zero pad)
            dwt = dw_ref[stage]              # (NC, KK) -- single load per stage
            acc = jnp.zeros_like(v)
            for t in range(KK):
                dy = t // K - PAD
                dx = t % K - PAD
                sh = (-(dy * W + dx)) % HW
                shifted = v if sh == 0 else pltpu.roll(v, shift=sh, axis=1)
                if dy == 0 and dx == 0:      # center tap needs no mask
                    contrib = shifted
                else:
                    contrib = shifted * msk[t:t + 1, :]      # sublane bcast
                acc = acc + contrib * dwt[:, t:t + 1]        # lane bcast
            return acc

        def pointwise(v, stage):
            # 1x1 conv as (2C-1) sublane rolls x per-row coefficients (VPU).
            pwt = pwc_ref[stage]             # (NC, 2C-1)
            acc = jnp.zeros_like(v)
            for d in range(D):
                sh = (d - (C - 1)) % NC
                rolled = v if sh == 0 else pltpu.roll(v, shift=sh, axis=0)
                acc = acc + rolled * pwt[:, d:d + 1]
            return acc

        def batchnorm(v, idx, relu):
            # training-mode BN, one-pass stats: var = E[v^2] - mean^2
            s1 = jnp.sum(v, axis=1, keepdims=True)           # (NC, 1)
            s2 = jnp.sum(v * v, axis=1, keepdims=True)
            mean = per_channel_total(s1) * inv_count
            var = per_channel_total(s2) * inv_count - mean * mean
            scale = gbv[:, idx:idx + 1] * lax.rsqrt(var + EPS)
            shift = gbv[:, 4 + idx:5 + idx] - mean * scale
            y = v * scale + shift
            if relu:
                y = jnp.maximum(y, 0.0)
            return y

        y = depthwise(x, 0)
        y = batchnorm(y, 0, relu=True)
        y = pointwise(y, 0)
        y = batchnorm(y, 1, relu=False)
        y = depthwise(y, 1)
        y = batchnorm(y, 2, relu=True)
        y = pointwise(y, 1)
        y = batchnorm(y, 3, relu=False)
        o_ref[...] = y                        # lane-dense full-width stores

    return kernel


# ------------------------------ wrapper ------------------------------------

def _build_pw_coeff(w_mats, N, C):
    """w_mats: (2, Cout, Cin) with Cout == Cin == C (module guarantees this).
    Returns (2, N*C, 2C-1) diagonal-band coefficients, band axis last."""
    NC, D = N * C, 2 * C - 1
    coeff = np.zeros((2, NC, D), np.float32)
    for s in range(2):
        for d in range(D):
            delta = d - (C - 1)
            for co in range(C):
                ci = co - delta
                if 0 <= ci < C:
                    for n in range(N):
                        coeff[s, n * C + co, d] = w_mats[s, co, ci]
    return jnp.asarray(coeff)


def _build_masks(H, W, K):
    """(K*K, H*W) float masks: mask[t, y*W+x] = 1 iff input (y+dy, x+dx) is
    in-bounds for tap t = (dy+PAD)*K + (dx+PAD)."""
    PAD = K // 2
    masks = np.zeros((K * K, H * W), np.float32)
    ys, xs = np.arange(H), np.arange(W)
    for t in range(K * K):
        dy, dx = t // K - PAD, t % K - PAD
        my = (ys + dy >= 0) & (ys + dy < H)
        mx = (xs + dx >= 0) & (xs + dx < W)
        masks[t] = (my[:, None] & mx[None, :]).astype(np.float32).reshape(-1)
    return jnp.asarray(masks)


def dwconv_block(x_nchw, dw1, dw2, pw1, pw2, gammas, betas):
    """x_nchw: (N, C, H, W).  dw1/dw2: (C, K, K) depthwise weights.
    pw1/pw2: (Cout, Cin) pointwise weights.  gammas/betas: (4, C).
    Returns (N, C, H, W) float32."""
    N, C, H, W = x_nchw.shape
    K = dw1.shape[-1]
    NC, HW, KK = N * C, H * W, K * K

    # lane-dense view: pure reshape, no transpose
    x2 = x_nchw.reshape(NC, HW).astype(jnp.float32)

    # depthwise weights, tap axis last: (2, NC, KK); row r uses channel r % C
    dwn = np.stack([np.asarray(dw1), np.asarray(dw2)]).reshape(2, C, KK)
    dw = jnp.asarray(np.tile(dwn, (1, N, 1)).astype(np.float32))   # (2, NC, KK)

    # pointwise diagonal-band coefficients, band axis last: (2, NC, 2C-1)
    pwc = _build_pw_coeff(np.stack([np.asarray(pw1), np.asarray(pw2)]), N, C)

    # BN affine params packed into one lane-dense tile: (NC, 8)
    g_np, b_np = np.asarray(gammas), np.asarray(betas)              # (4, C)
    gb = np.zeros((NC, 8), np.float32)
    for r in range(NC):
        c = r % C
        gb[r, 0:4] = g_np[:, c]
        gb[r, 4:8] = b_np[:, c]
    gb = jnp.asarray(gb)

    # precomputed boundary masks: (KK, HW)
    mask = _build_masks(H, W, K)

    kernel = make_kernel(N, C, H, W, K)

    elems = NC * HW
    cost = pl.CostEstimate(
        flops=elems * (2 * 3 * KK + 2 * 2 * (2 * C - 1) + 4 * 8),
        transcendentals=4 * NC,
        bytes_accessed=4 * (2 * elems + dw.size + pwc.size + gb.size + mask.size),
    )

    out2 = pl.pallas_call(
        kernel,
        out_shape=jax.ShapeDtypeStruct((NC, HW), jnp.float32),
        grid=(1,),
        in_specs=[
            pl.BlockSpec((NC, HW), lambda i: (0, 0)),
            pl.BlockSpec(dw.shape, lambda i: (0, 0, 0)),
            pl.BlockSpec(pwc.shape, lambda i: (0, 0, 0)),
            pl.BlockSpec(gb.shape, lambda i: (0, 0)),
            pl.BlockSpec(mask.shape, lambda i: (0, 0)),
        ],
        out_specs=pl.BlockSpec((NC, HW), lambda i: (0, 0)),
        # Production: row-tile grid axis marked "parallel" (v7x 2 TCs) with
        # cross-tile BN partial sums; single block is optimal at this size.
        compiler_params=pltpu.CompilerParams(dimension_semantics=("arbitrary",)),
        cost_estimate=cost,
    )(x2, dw, pwc, gb, mask)

    # lane-dense output -> NCHW is again a pure reshape
    return out2.reshape(N, C, H, W)


# --------------------------- pure-JAX reference ---------------------------

def _ref_dwconv(x, w_torch):   # x NCHW, w (C,1,K,K)
    return lax.conv_general_dilated(
        x, w_torch, (1, 1), ((2, 2), (2, 2)),
        dimension_numbers=("NCHW", "OIHW", "NCHW"),
        feature_group_count=x.shape[1])


def _ref_pwconv(x, w_torch):   # w (Cout,Cin,1,1)
    return lax.conv_general_dilated(
        x, w_torch, (1, 1), ((0, 0), (0, 0)),
        dimension_numbers=("NCHW", "OIHW", "NCHW"))


def _ref_bn(x, g, b):
    mean = x.mean(axis=(0, 2, 3), keepdims=True)
    var = ((x - mean) ** 2).mean(axis=(0, 2, 3), keepdims=True)
    return (x - mean) / jnp.sqrt(var + EPS) * g[None, :, None, None] + b[None, :, None, None]


def ref_forward(x, dw1, pw1, dw2, pw2, gammas, betas):
    x = _ref_dwconv(x, dw1)
    x = jnp.maximum(_ref_bn(x, gammas[0], betas[0]), 0.0)
    x = _ref_pwconv(x, pw1)
    x = _ref_bn(x, gammas[1], betas[1])
    x = _ref_dwconv(x, dw2)
    x = jnp.maximum(_ref_bn(x, gammas[2], betas[2]), 0.0)
    x = _ref_pwconv(x, pw2)
    x = _ref_bn(x, gammas[3], betas[3])
    return x


# --------------------------------- main -----------------------------------

if __name__ == "__main__":
    N, C, H, W, K = 2, 4, 16, 16, 5   # output_channels=4, size=5 (pad=2 -> same HW)

    key = jax.random.PRNGKey(0)
    ks = jax.random.split(key, 16)

    # deterministic synthetic parameters (shapes follow the module __init__)
    dw1 = jax.random.normal(ks[0], (C, K, K), jnp.float32) * 0.1   # depthwise #1
    dw2 = jax.random.normal(ks[1], (C, K, K), jnp.float32) * 0.1   # depthwise #2
    pw1 = jax.random.normal(ks[2], (C, C), jnp.float32) * 0.1      # pointwise #1 (Cout,Cin)
    pw2 = jax.random.normal(ks[3], (C, C), jnp.float32) * 0.1      # pointwise #2
    gammas = jnp.stack([1.0 + 0.1 * jax.random.normal(ks[4 + i], (C,), jnp.float32)
                        for i in range(4)])
    betas = jnp.stack([0.1 * jax.random.normal(ks[8 + i], (C,), jnp.float32)
                       for i in range(4)])

    x = jax.random.normal(ks[12], (N, C, H, W), jnp.float32)

    out = dwconv_block(x, dw1, dw2, pw1, pw2, gammas, betas)
    out = jax.block_until_ready(out)

    ref = ref_forward(x,
                      dw1[:, None, :, :], pw1[:, :, None, None],
                      dw2[:, None, :, :], pw2[:, :, None, None],
                      gammas, betas)
    ref = jax.block_until_ready(ref)

    np.testing.assert_allclose(np.asarray(out), np.asarray(ref), rtol=1e-3, atol=1e-3)
    print("KERNEL_OK")
</pallas_src>

<mosaic_0001>
module attributes {stable_mosaic.version = 11 : i64} {
  func.func @kernel(%arg0: i32, %arg1: memref<8x256xf32, #tpu.memory_space<vmem>>, %arg2: memref<2x8x25xf32, #tpu.memory_space<vmem>>, %arg3: memref<2x8x7xf32, #tpu.memory_space<vmem>>, %arg4: memref<8x8xf32, #tpu.memory_space<vmem>>, %arg5: memref<25x256xf32, #tpu.memory_space<vmem>>, %arg6: memref<8x256xf32, #tpu.memory_space<vmem>>) attributes {dimension_semantics = [#tpu.dimension_semantics<arbitrary>], iteration_bounds = array<i64: 1>, scalar_prefetch = 0 : i64, scratch_operands = 0 : i64, tpu.core_type = #tpu.core_type<tc>, window_params = [{pipeline_mode = #tpu.pipeline_mode<synchronous>, transform_indices = @transform_0, window_bounds = array<i64: 8, 256>}, {pipeline_mode = #tpu.pipeline_mode<synchronous>, transform_indices = @transform_1, window_bounds = array<i64: 2, 8, 25>}, {pipeline_mode = #tpu.pipeline_mode<synchronous>, transform_indices = @transform_2, window_bounds = array<i64: 2, 8, 7>}, {pipeline_mode = #tpu.pipeline_mode<synchronous>, transform_indices = @transform_3, window_bounds = array<i64: 8, 8>}, {pipeline_mode = #tpu.pipeline_mode<synchronous>, transform_indices = @transform_4, window_bounds = array<i64: 25, 256>}, {pipeline_mode = #tpu.pipeline_mode<synchronous>, transform_indices = @transform_5, window_bounds = array<i64: 8, 256>}]} {
    %c0 = arith.constant 0 : index
    %c0_0 = arith.constant 0 : index
    %0 = vector.load %arg1[%c0, %c0_0] : memref<8x256xf32, #tpu.memory_space<vmem>>, vector<8x256xf32>
    %c0_1 = arith.constant 0 : index
    %c0_2 = arith.constant 0 : index
    %1 = vector.load %arg5[%c0_1, %c0_2] : memref<25x256xf32, #tpu.memory_space<vmem>>, vector<25x256xf32>
    %c0_3 = arith.constant 0 : index
    %c0_4 = arith.constant 0 : index
    %2 = vector.load %arg4[%c0_3, %c0_4] : memref<8x8xf32, #tpu.memory_space<vmem>>, vector<8x8xf32>
    %c0_5 = arith.constant 0 : index
    %c0_6 = arith.constant 0 : index
    %c0_7 = arith.constant 0 : index
    %3 = vector.load %arg2[%c0_5, %c0_6, %c0_7] : memref<2x8x25xf32, #tpu.memory_space<vmem>>, vector<1x8x25xf32>
    %4 = vector.shape_cast %3 : vector<1x8x25xf32> to vector<8x25xf32>
    %cst = arith.constant 0.000000e+00 : f32
    %5 = vector.broadcast %cst : f32 to vector<8x256xf32>
    %c34_i32 = arith.constant 34 : i32
    %6 = tpu.dynamic_rotate %0 by %c34_i32 dim 1 : vector<8x256xf32>, i32 -> vector<8x256xf32>
    %7 = vector.extract_strided_slice %1 {offsets = [0, 0], sizes = [1, 256], strides = [1, 1]} : vector<25x256xf32> to vector<1x256xf32>
    %8 = vector.broadcast %7 : vector<1x256xf32> to vector<8x256xf32>
    %9 = arith.mulf %6, %8 : vector<8x256xf32>
    %10 = vector.extract_strided_slice %4 {offsets = [0, 0], sizes = [8, 1], strides = [1, 1]} : vector<8x25xf32> to vector<8x1xf32>
    %11 = vector.broadcast %10 : vector<8x1xf32> to vector<8x256xf32>
    %12 = arith.mulf %9, %11 : vector<8x256xf32>
    %13 = arith.addf %5, %12 : vector<8x256xf32>
    %c33_i32 = arith.constant 33 : i32
    %14 = tpu.dynamic_rotate %0 by %c33_i32 dim 1 : vector<8x256xf32>, i32 -> vector<8x256xf32>
    %15 = vector.extract_strided_slice %1 {offsets = [1, 0], sizes = [1, 256], strides = [1, 1]} : vector<25x256xf32> to vector<1x256xf32>
    %16 = vector.broadcast %15 : vector<1x256xf32> to vector<8x256xf32>
    %17 = arith.mulf %14, %16 : vector<8x256xf32>
    %18 = vector.extract_strided_slice %4 {offsets = [0, 1], sizes = [8, 1], strides = [1, 1]} : vector<8x25xf32> to vector<8x1xf32>
    %19 = vector.broadcast %18 : vector<8x1xf32> to vector<8x256xf32>
    %20 = arith.mulf %17, %19 : vector<8x256xf32>
    %21 = arith.addf %13, %20 : vector<8x256xf32>
    %c32_i32 = arith.constant 32 : i32
    %22 = tpu.dynamic_rotate %0 by %c32_i32 dim 1 : vector<8x256xf32>, i32 -> vector<8x256xf32>
    %23 = vector.extract_strided_slice %1 {offsets = [2, 0], sizes = [1, 256], strides = [1, 1]} : vector<25x256xf32> to vector<1x256xf32>
    %24 = vector.broadcast %23 : vector<1x256xf32> to vector<8x256xf32>
    %25 = arith.mulf %22, %24 : vector<8x256xf32>
    %26 = vector.extract_strided_slice %4 {offsets = [0, 2], sizes = [8, 1], strides = [1, 1]} : vector<8x25xf32> to vector<8x1xf32>
    %27 = vector.broadcast %26 : vector<8x1xf32> to vector<8x256xf32>
    %28 = arith.mulf %25, %27 : vector<8x256xf32>
    %29 = arith.addf %21, %28 : vector<8x256xf32>
    %c31_i32 = arith.constant 31 : i32
    %30 = tpu.dynamic_rotate %0 by %c31_i32 dim 1 : vector<8x256xf32>, i32 -> vector<8x256xf32>
    %31 = vector.extract_strided_slice %1 {offsets = [3, 0], sizes = [1, 256], strides = [1, 1]} : vector<25x256xf32> to vector<1x256xf32>
    %32 = vector.broadcast %31 : vector<1x256xf32> to vector<8x256xf32>
    %33 = arith.mulf %30, %32 : vector<8x256xf32>
    %34 = vector.extract_strided_slice %4 {offsets = [0, 3], sizes = [8, 1], strides = [1, 1]} : vector<8x25xf32> to vector<8x1xf32>
    %35 = vector.broadcast %34 : vector<8x1xf32> to vector<8x256xf32>
    %36 = arith.mulf %33, %35 : vector<8x256xf32>
    %37 = arith.addf %29, %36 : vector<8x256xf32>
    %c30_i32 = arith.constant 30 : i32
    %38 = tpu.dynamic_rotate %0 by %c30_i32 dim 1 : vector<8x256xf32>, i32 -> vector<8x256xf32>
    %39 = vector.extract_strided_slice %1 {offsets = [4, 0], sizes = [1, 256], strides = [1, 1]} : vector<25x256xf32> to vector<1x256xf32>
    %40 = vector.broadcast %39 : vector<1x256xf32> to vector<8x256xf32>
    %41 = arith.mulf %38, %40 : vector<8x256xf32>
    %42 = vector.extract_strided_slice %4 {offsets = [0, 4], sizes = [8, 1], strides = [1, 1]} : vector<8x25xf32> to vector<8x1xf32>
    %43 = vector.broadcast %42 : vector<8x1xf32> to vector<8x256xf32>
    %44 = arith.mulf %41, %43 : vector<8x256xf32>
    %45 = arith.addf %37, %44 : vector<8x256xf32>
    %c18_i32 = arith.constant 18 : i32
    %46 = tpu.dynamic_rotate %0 by %c18_i32 dim 1 : vector<8x256xf32>, i32 -> vector<8x256xf32>
    %47 = vector.extract_strided_slice %1 {offsets = [5, 0], sizes = [1, 256], strides = [1, 1]} : vector<25x256xf32> to vector<1x256xf32>
    %48 = vector.broadcast %47 : vector<1x256xf32> to vector<8x256xf32>
    %49 = arith.mulf %46, %48 : vector<8x256xf32>
    %50 = vector.extract_strided_slice %4 {offsets = [0, 5], sizes = [8, 1], strides = [1, 1]} : vector<8x25xf32> to vector<8x1xf32>
    %51 = vector.broadcast %50 : vector<8x1xf32> to vector<8x256xf32>
    %52 = arith.mulf %49, %51 : vector<8x256xf32>
    %53 = arith.addf %45, %52 : vector<8x256xf32>
    %c17_i32 = arith.constant 17 : i32
    %54 = tpu.dynamic_rotate %0 by %c17_i32 dim 1 : vector<8x256xf32>, i32 -> vector<8x256xf32>
    %55 = vector.extract_strided_slice %1 {offsets = [6, 0], sizes = [1, 256], strides = [1, 1]} : vector<25x256xf32> to vector<1x256xf32>
    %56 = vector.broadcast %55 : vector<1x256xf32> to vector<8x256xf32>
    %57 = arith.mulf %54, %56 : vector<8x256xf32>
    %58 = vector.extract_strided_slice %4 {offsets = [0, 6], sizes = [8, 1], strides = [1, 1]} : vector<8x25xf32> to vector<8x1xf32>
    %59 = vector.broadcast %58 : vector<8x1xf32> to vector<8x256xf32>
    %60 = arith.mulf %57, %59 : vector<8x256xf32>
    %61 = arith.addf %53, %60 : vector<8x256xf32>
    %c16_i32 = arith.constant 16 : i32
    %62 = tpu.dynamic_rotate %0 by %c16_i32 dim 1 : vector<8x256xf32>, i32 -> vector<8x256xf32>
    %63 = vector.extract_strided_slice %1 {offsets = [7, 0], sizes = [1, 256], strides = [1, 1]} : vector<25x256xf32> to vector<1x256xf32>
    %64 = vector.broadcast %63 : vector<1x256xf32> to vector<8x256xf32>
    %65 = arith.mulf %62, %64 : vector<8x256xf32>
    %66 = vector.extract_strided_slice %4 {offsets = [0, 7], sizes = [8, 1], strides = [1, 1]} : vector<8x25xf32> to vector<8x1xf32>
    %67 = vector.broadcast %66 : vector<8x1xf32> to vector<8x256xf32>
    %68 = arith.mulf %65, %67 : vector<8x256xf32>
    %69 = arith.addf %61, %68 : vector<8x256xf32>
    %c15_i32 = arith.constant 15 : i32
    %70 = tpu.dynamic_rotate %0 by %c15_i32 dim 1 : vector<8x256xf32>, i32 -> vector<8x256xf32>
    %71 = vector.extract_strided_slice %1 {offsets = [8, 0], sizes = [1, 256], strides = [1, 1]} : vector<25x256xf32> to vector<1x256xf32>
    %72 = vector.broadcast %71 : vector<1x256xf32> to vector<8x256xf32>
    %73 = arith.mulf %70, %72 : vector<8x256xf32>
    %74 = vector.extract_strided_slice %4 {offsets = [0, 8], sizes = [8, 1], strides = [1, 1]} : vector<8x25xf32> to vector<8x1xf32>
    %75 = vector.broadcast %74 : vector<8x1xf32> to vector<8x256xf32>
    %76 = arith.mulf %73, %75 : vector<8x256xf32>
    %77 = arith.addf %69, %76 : vector<8x256xf32>
    %c14_i32 = arith.constant 14 : i32
    %78 = tpu.dynamic_rotate %0 by %c14_i32 dim 1 : vector<8x256xf32>, i32 -> vector<8x256xf32>
    %79 = vector.extract_strided_slice %1 {offsets = [9, 0], sizes = [1, 256], strides = [1, 1]} : vector<25x256xf32> to vector<1x256xf32>
    %80 = vector.broadcast %79 : vector<1x256xf32> to vector<8x256xf32>
    %81 = arith.mulf %78, %80 : vector<8x256xf32>
    %82 = vector.extract_strided_slice %4 {offsets = [0, 9], sizes = [8, 1], strides = [1, 1]} : vector<8x25xf32> to vector<8x1xf32>
    %83 = vector.broadcast %82 : vector<8x1xf32> to vector<8x256xf32>
    %84 = arith.mulf %81, %83 : vector<8x256xf32>
    %85 = arith.addf %77, %84 : vector<8x256xf32>
    %c2_i32 = arith.constant 2 : i32
    %86 = tpu.dynamic_rotate %0 by %c2_i32 dim 1 : vector<8x256xf32>, i32 -> vector<8x256xf32>
    %87 = vector.extract_strided_slice %1 {offsets = [10, 0], sizes = [1, 256], strides = [1, 1]} : vector<25x256xf32> to vector<1x256xf32>
    %88 = vector.broadcast %87 : vector<1x256xf32> to vector<8x256xf32>
    %89 = arith.mulf %86, %88 : vector<8x256xf32>
    %90 = vector.extract_strided_slice %4 {offsets = [0, 10], sizes = [8, 1], strides = [1, 1]} : vector<8x25xf32> to vector<8x1xf32>
    %91 = vector.broadcast %90 : vector<8x1xf32> to vector<8x256xf32>
    %92 = arith.mulf %89, %91 : vector<8x256xf32>
    %93 = arith.addf %85, %92 : vector<8x256xf32>
    %c1_i32 = arith.constant 1 : i32
    %94 = tpu.dynamic_rotate %0 by %c1_i32 dim 1 : vector<8x256xf32>, i32 -> vector<8x256xf32>
    %95 = vector.extract_strided_slice %1 {offsets = [11, 0], sizes = [1, 256], strides = [1, 1]} : vector<25x256xf32> to vector<1x256xf32>
    %96 = vector.broadcast %95 : vector<1x256xf32> to vector<8x256xf32>
    %97 = arith.mulf %94, %96 : vector<8x256xf32>
    %98 = vector.extract_strided_slice %4 {offsets = [0, 11], sizes = [8, 1], strides = [1, 1]} : vector<8x25xf32> to vector<8x1xf32>
    %99 = vector.broadcast %98 : vector<8x1xf32> to vector<8x256xf32>
    %100 = arith.mulf %97, %99 : vector<8x256xf32>
    %101 = arith.addf %93, %100 : vector<8x256xf32>
    %102 = vector.extract_strided_slice %4 {offsets = [0, 12], sizes = [8, 1], strides = [1, 1]} : vector<8x25xf32> to vector<8x1xf32>
    %103 = vector.broadcast %102 : vector<8x1xf32> to vector<8x256xf32>
    %104 = arith.mulf %0, %103 : vector<8x256xf32>
    %105 = arith.addf %101, %104 : vector<8x256xf32>
    %c255_i32 = arith.constant 255 : i32
    %106 = tpu.dynamic_rotate %0 by %c255_i32 dim 1 : vector<8x256xf32>, i32 -> vector<8x256xf32>
    %107 = vector.extract_strided_slice %1 {offsets = [13, 0], sizes = [1, 256], strides = [1, 1]} : vector<25x256xf32> to vector<1x256xf32>
    %108 = vector.broadcast %107 : vector<1x256xf32> to vector<8x256xf32>
    %109 = arith.mulf %106, %108 : vector<8x256xf32>
    %110 = vector.extract_strided_slice %4 {offsets = [0, 13], sizes = [8, 1], strides = [1, 1]} : vector<8x25xf32> to vector<8x1xf32>
    %111 = vector.broadcast %110 : vector<8x1xf32> to vector<8x256xf32>
    %112 = arith.mulf %109, %111 : vector<8x256xf32>
    %113 = arith.addf %105, %112 : vector<8x256xf32>
    %c254_i32 = arith.constant 254 : i32
    %114 = tpu.dynamic_rotate %0 by %c254_i32 dim 1 : vector<8x256xf32>, i32 -> vector<8x256xf32>
    %115 = vector.extract_strided_slice %1 {offsets = [14, 0], sizes = [1, 256], strides = [1, 1]} : vector<25x256xf32> to vector<1x256xf32>
    %116 = vector.broadcast %115 : vector<1x256xf32> to vector<8x256xf32>
    %117 = arith.mulf %114, %116 : vector<8x256xf32>
    %118 = vector.extract_strided_slice %4 {offsets = [0, 14], sizes = [8, 1], strides = [1, 1]} : vector<8x25xf32> to vector<8x1xf32>
    %119 = vector.broadcast %118 : vector<8x1xf32> to vector<8x256xf32>
    %120 = arith.mulf %117, %119 : vector<8x256xf32>
    %121 = arith.addf %113, %120 : vector<8x256xf32>
    %c242_i32 = arith.constant 242 : i32
    %122 = tpu.dynamic_rotate %0 by %c242_i32 dim 1 : vector<8x256xf32>, i32 -> vector<8x256xf32>
    %123 = vector.extract_strided_slice %1 {offsets = [15, 0], sizes = [1, 256], strides = [1, 1]} : vector<25x256xf32> to vector<1x256xf32>
    %124 = vector.broadcast %123 : vector<1x256xf32> to vector<8x256xf32>
    %125 = arith.mulf %122, %124 : vector<8x256xf32>
    %126 = vector.extract_strided_slice %4 {offsets = [0, 15], sizes = [8, 1], strides = [1, 1]} : vector<8x25xf32> to vector<8x1xf32>
    %127 = vector.broadcast %126 : vector<8x1xf32> to vector<8x256xf32>
    %128 = arith.mulf %125, %127 : vector<8x256xf32>
    %129 = arith.addf %121, %128 : vector<8x256xf32>
    %c241_i32 = arith.constant 241 : i32
    %130 = tpu.dynamic_rotate %0 by %c241_i32 dim 1 : vector<8x256xf32>, i32 -> vector<8x256xf32>
    %131 = vector.extract_strided_slice %1 {offsets = [16, 0], sizes = [1, 256], strides = [1, 1]} : vector<25x256xf32> to vector<1x256xf32>
    %132 = vector.broadcast %131 : vector<1x256xf32> to vector<8x256xf32>
    %133 = arith.mulf %130, %132 : vector<8x256xf32>
    %134 = vector.extract_strided_slice %4 {offsets = [0, 16], sizes = [8, 1], strides = [1, 1]} : vector<8x25xf32> to vector<8x1xf32>
    %135 = vector.broadcast %134 : vector<8x1xf32> to vector<8x256xf32>
    %136 = arith.mulf %133, %135 : vector<8x256xf32>
    %137 = arith.addf %129, %136 : vector<8x256xf32>
    %c240_i32 = arith.constant 240 : i32
    %138 = tpu.dynamic_rotate %0 by %c240_i32 dim 1 : vector<8x256xf32>, i32 -> vector<8x256xf32>
    %139 = vector.extract_strided_slice %1 {offsets = [17, 0], sizes = [1, 256], strides = [1, 1]} : vector<25x256xf32> to vector<1x256xf32>
    %140 = vector.broadcast %139 : vector<1x256xf32> to vector<8x256xf32>
    %141 = arith.mulf %138, %140 : vector<8x256xf32>
    %142 = vector.extract_strided_slice %4 {offsets = [0, 17], sizes = [8, 1], strides = [1, 1]} : vector<8x25xf32> to vector<8x1xf32>
    %143 = vector.broadcast %142 : vector<8x1xf32> to vector<8x256xf32>
    %144 = arith.mulf %141, %143 : vector<8x256xf32>
    %145 = arith.addf %137, %144 : vector<8x256xf32>
    %c239_i32 = arith.constant 239 : i32
    %146 = tpu.dynamic_rotate %0 by %c239_i32 dim 1 : vector<8x256xf32>, i32 -> vector<8x256xf32>
    %147 = vector.extract_strided_slice %1 {offsets = [18, 0], sizes = [1, 256], strides = [1, 1]} : vector<25x256xf32> to vector<1x256xf32>
    %148 = vector.broadcast %147 : vector<1x256xf32> to vector<8x256xf32>
    %149 = arith.mulf %146, %148 : vector<8x256xf32>
    %150 = vector.extract_strided_slice %4 {offsets = [0, 18], sizes = [8, 1], strides = [1, 1]} : vector<8x25xf32> to vector<8x1xf32>
    %151 = vector.broadcast %150 : vector<8x1xf32> to vector<8x256xf32>
    %152 = arith.mulf %149, %151 : vector<8x256xf32>
    %153 = arith.addf %145, %152 : vector<8x256xf32>
    %c238_i32 = arith.constant 238 : i32
    %154 = tpu.dynamic_rotate %0 by %c238_i32 dim 1 : vector<8x256xf32>, i32 -> vector<8x256xf32>
    %155 = vector.extract_strided_slice %1 {offsets = [19, 0], sizes = [1, 256], strides = [1, 1]} : vector<25x256xf32> to vector<1x256xf32>
    %156 = vector.broadcast %155 : vector<1x256xf32> to vector<8x256xf32>
    %157 = arith.mulf %154, %156 : vector<8x256xf32>
    %158 = vector.extract_strided_slice %4 {offsets = [0, 19], sizes = [8, 1], strides = [1, 1]} : vector<8x25xf32> to vector<8x1xf32>
    %159 = vector.broadcast %158 : vector<8x1xf32> to vector<8x256xf32>
    %160 = arith.mulf %157, %159 : vector<8x256xf32>
    %161 = arith.addf %153, %160 : vector<8x256xf32>
    %c226_i32 = arith.constant 226 : i32
    %162 = tpu.dynamic_rotate %0 by %c226_i32 dim 1 : vector<8x256xf32>, i32 -> vector<8x256xf32>
    %163 = vector.extract_strided_slice %1 {offsets = [20, 0], sizes = [1, 256], strides = [1, 1]} : vector<25x256xf32> to vector<1x256xf32>
    %164 = vector.broadcast %163 : vector<1x256xf32> to vector<8x256xf32>
    %165 = arith.mulf %162, %164 : vector<8x256xf32>
    %166 = vector.extract_strided_slice %4 {offsets = [0, 20], sizes = [8, 1], strides = [1, 1]} : vector<8x25xf32> to vector<8x1xf32>
    %167 = vector.broadcast %166 : vector<8x1xf32> to vector<8x256xf32>
    %168 = arith.mulf %165, %167 : vector<8x256xf32>
    %169 = arith.addf %161, %168 : vector<8x256xf32>
    %c225_i32 = arith.constant 225 : i32
    %170 = tpu.dynamic_rotate %0 by %c225_i32 dim 1 : vector<8x256xf32>, i32 -> vector<8x256xf32>
    %171 = vector.extract_strided_slice %1 {offsets = [21, 0], sizes = [1, 256], strides = [1, 1]} : vector<25x256xf32> to vector<1x256xf32>
    %172 = vector.broadcast %171 : vector<1x256xf32> to vector<8x256xf32>
    %173 = arith.mulf %170, %172 : vector<8x256xf32>
    %174 = vector.extract_strided_slice %4 {offsets = [0, 21], sizes = [8, 1], strides = [1, 1]} : vector<8x25xf32> to vector<8x1xf32>
    %175 = vector.broadcast %174 : vector<8x1xf32> to vector<8x256xf32>
    %176 = arith.mulf %173, %175 : vector<8x256xf32>
    %177 = arith.addf %169, %176 : vector<8x256xf32>
    %c224_i32 = arith.constant 224 : i32
    %178 = tpu.dynamic_rotate %0 by %c224_i32 dim 1 : vector<8x256xf32>, i32 -> vector<8x256xf32>
    %179 = vector.extract_strided_slice %1 {offsets = [22, 0], sizes = [1, 256], strides = [1, 1]} : vector<25x256xf32> to vector<1x256xf32>
    %180 = vector.broadcast %179 : vector<1x256xf32> to vector<8x256xf32>
    %181 = arith.mulf %178, %180 : vector<8x256xf32>
    %182 = vector.extract_strided_slice %4 {offsets = [0, 22], sizes = [8, 1], strides = [1, 1]} : vector<8x25xf32> to vector<8x1xf32>
    %183 = vector.broadcast %182 : vector<8x1xf32> to vector<8x256xf32>
    %184 = arith.mulf %181, %183 : vector<8x256xf32>
    %185 = arith.addf %177, %184 : vector<8x256xf32>
    %c223_i32 = arith.constant 223 : i32
    %186 = tpu.dynamic_rotate %0 by %c223_i32 dim 1 : vector<8x256xf32>, i32 -> vector<8x256xf32>
    %187 = vector.extract_strided_slice %1 {offsets = [23, 0], sizes = [1, 256], strides = [1, 1]} : vector<25x256xf32> to vector<1x256xf32>
    %188 = vector.broadcast %187 : vector<1x256xf32> to vector<8x256xf32>
    %189 = arith.mulf %186, %188 : vector<8x256xf32>
    %190 = vector.extract_strided_slice %4 {offsets = [0, 23], sizes = [8, 1], strides = [1, 1]} : vector<8x25xf32> to vector<8x1xf32>
    %191 = vector.broadcast %190 : vector<8x1xf32> to vector<8x256xf32>
    %192 = arith.mulf %189, %191 : vector<8x256xf32>
    %193 = arith.addf %185, %192 : vector<8x256xf32>
    %c222_i32 = arith.constant 222 : i32
    %194 = tpu.dynamic_rotate %0 by %c222_i32 dim 1 : vector<8x256xf32>, i32 -> vector<8x256xf32>
    %195 = vector.extract_strided_slice %1 {offsets = [24, 0], sizes = [1, 256], strides = [1, 1]} : vector<25x256xf32> to vector<1x256xf32>
    %196 = vector.broadcast %195 : vector<1x256xf32> to vector<8x256xf32>
    %197 = arith.mulf %194, %196 : vector<8x256xf32>
    %198 = vector.extract_strided_slice %4 {offsets = [0, 24], sizes = [8, 1], strides = [1, 1]} : vector<8x25xf32> to vector<8x1xf32>
    %199 = vector.broadcast %198 : vector<8x1xf32> to vector<8x256xf32>
    %200 = arith.mulf %197, %199 : vector<8x256xf32>
    %201 = arith.addf %193, %200 : vector<8x256xf32>
    %cst_8 = arith.constant dense<0.000000e+00> : vector<8xf32>
    %202 = vector.multi_reduction <add>, %201, %cst_8 [1] : vector<8x256xf32> to vector<8xf32>
    %203 = vector.shape_cast %202 : vector<8xf32> to vector<8x1xf32>
    %204 = arith.mulf %201, %201 : vector<8x256xf32>
    %cst_9 = arith.constant dense<0.000000e+00> : vector<8xf32>
    %205 = vector.multi_reduction <add>, %204, %cst_9 [1] : vector<8x256xf32> to vector<8xf32>
    %206 = vector.shape_cast %205 : vector<8xf32> to vector<8x1xf32>
    %c4_i32 = arith.constant 4 : i32
    %207 = tpu.dynamic_rotate %203 by %c4_i32 dim 0 : vector<8x1xf32>, i32 -> vector<8x1xf32>
    %208 = arith.addf %203, %207 : vector<8x1xf32>
    %cst_10 = arith.constant 0.001953125 : f32
    %209 = vector.broadcast %cst_10 : f32 to vector<8x1xf32>
    %210 = arith.mulf %208, %209 : vector<8x1xf32>
    %c4_i32_11 = arith.constant 4 : i32
    %211 = tpu.dynamic_rotate %206 by %c4_i32_11 dim 0 : vector<8x1xf32>, i32 -> vector<8x1xf32>
    %212 = arith.addf %206, %211 : vector<8x1xf32>
    %cst_12 = arith.constant 0.001953125 : f32
    %213 = vector.broadcast %cst_12 : f32 to vector<8x1xf32>
    %214 = arith.mulf %212, %213 : vector<8x1xf32>
    %215 = arith.mulf %210, %210 : vector<8x1xf32>
    %216 = arith.subf %214, %215 : vector<8x1xf32>
    %217 = vector.extract_strided_slice %2 {offsets = [0, 0], sizes = [8, 1], strides = [1, 1]} : vector<8x8xf32> to vector<8x1xf32>
    %cst_13 = arith.constant 9.99999974E-6 : f32
    %218 = vector.broadcast %cst_13 : f32 to vector<8x1xf32>
    %219 = arith.addf %216, %218 : vector<8x1xf32>
    %220 = math.rsqrt %219 : vector<8x1xf32>
    %221 = arith.mulf %217, %220 : vector<8x1xf32>
    %222 = vector.extract_strided_slice %2 {offsets = [0, 4], sizes = [8, 1], strides = [1, 1]} : vector<8x8xf32> to vector<8x1xf32>
    %223 = arith.mulf %210, %221 : vector<8x1xf32>
    %224 = arith.subf %222, %223 : vector<8x1xf32>
    %225 = vector.broadcast %221 : vector<8x1xf32> to vector<8x256xf32>
    %226 = arith.mulf %201, %225 : vector<8x256xf32>
    %227 = vector.broadcast %224 : vector<8x1xf32> to vector<8x256xf32>
    %228 = arith.addf %226, %227 : vector<8x256xf32>
    %cst_14 = arith.constant 0.000000e+00 : f32
    %229 = vector.broadcast %cst_14 : f32 to vector<8x256xf32>
    %230 = arith.maximumf %228, %229 : vector<8x256xf32>
    %c0_15 = arith.constant 0 : index
    %c0_16 = arith.constant 0 : index
    %c0_17 = arith.constant 0 : index
    %231 = vector.load %arg3[%c0_15, %c0_16, %c0_17] : memref<2x8x7xf32, #tpu.memory_space<vmem>>, vector<1x8x7xf32>
    %232 = vector.shape_cast %231 : vector<1x8x7xf32> to vector<8x7xf32>
    %cst_18 = arith.constant 0.000000e+00 : f32
    %233 = vector.broadcast %cst_18 : f32 to vector<8x256xf32>
    %c5_i32 = arith.constant 5 : i32
    %234 = tpu.dynamic_rotate %230 by %c5_i32 dim 0 : vector<8x256xf32>, i32 -> vector<8x256xf32>
    %235 = vector.extract_strided_slice %232 {offsets = [0, 0], sizes = [8, 1], strides = [1, 1]} : vector<8x7xf32> to vector<8x1xf32>
    %236 = vector.broadcast %235 : vector<8x1xf32> to vector<8x256xf32>
    %237 = arith.mulf %234, %236 : vector<8x256xf32>
    %238 = arith.addf %233, %237 : vector<8x256xf32>
    %c6_i32 = arith.constant 6 : i32
    %239 = tpu.dynamic_rotate %230 by %c6_i32 dim 0 : vector<8x256xf32>, i32 -> vector<8x256xf32>
    %240 = vector.extract_strided_slice %232 {offsets = [0, 1], sizes = [8, 1], strides = [1, 1]} : vector<8x7xf32> to vector<8x1xf32>
    %241 = vector.broadcast %240 : vector<8x1xf32> to vector<8x256xf32>
    %242 = arith.mulf %239, %241 : vector<8x256xf32>
    %243 = arith.addf %238, %242 : vector<8x256xf32>
    %c7_i32 = arith.constant 7 : i32
    %244 = tpu.dynamic_rotate %230 by %c7_i32 dim 0 : vector<8x256xf32>, i32 -> vector<8x256xf32>
    %245 = vector.extract_strided_slice %232 {offsets = [0, 2], sizes = [8, 1], strides = [1, 1]} : vector<8x7xf32> to vector<8x1xf32>
    %246 = vector.broadcast %245 : vector<8x1xf32> to vector<8x256xf32>
    %247 = arith.mulf %244, %246 : vector<8x256xf32>
    %248 = arith.addf %243, %247 : vector<8x256xf32>
    %249 = vector.extract_strided_slice %232 {offsets = [0, 3], sizes = [8, 1], strides = [1, 1]} : vector<8x7xf32> to vector<8x1xf32>
    %250 = vector.broadcast %249 : vector<8x1xf32> to vector<8x256xf32>
    %251 = arith.mulf %230, %250 : vector<8x256xf32>
    %252 = arith.addf %248, %251 : vector<8x256xf32>
    %c1_i32_19 = arith.constant 1 : i32
    %253 = tpu.dynamic_rotate %230 by %c1_i32_19 dim 0 : vector<8x256xf32>, i32 -> vector<8x256xf32>
    %254 = vector.extract_strided_slice %232 {offsets = [0, 4], sizes = [8, 1], strides = [1, 1]} : vector<8x7xf32> to vector<8x1xf32>
    %255 = vector.broadcast %254 : vector<8x1xf32> to vector<8x256xf32>
    %256 = arith.mulf %253, %255 : vector<8x256xf32>
    %257 = arith.addf %252, %256 : vector<8x256xf32>
    %c2_i32_20 = arith.constant 2 : i32
    %258 = tpu.dynamic_rotate %230 by %c2_i32_20 dim 0 : vector<8x256xf32>, i32 -> vector<8x256xf32>
    %259 = vector.extract_strided_slice %232 {offsets = [0, 5], sizes = [8, 1], strides = [1, 1]} : vector<8x7xf32> to vector<8x1xf32>
    %260 = vector.broadcast %259 : vector<8x1xf32> to vector<8x256xf32>
    %261 = arith.mulf %258, %260 : vector<8x256xf32>
    %262 = arith.addf %257, %261 : vector<8x256xf32>
    %c3_i32 = arith.constant 3 : i32
    %263 = tpu.dynamic_rotate %230 by %c3_i32 dim 0 : vector<8x256xf32>, i32 -> vector<8x256xf32>
    %264 = vector.extract_strided_slice %232 {offsets = [0, 6], sizes = [8, 1], strides = [1, 1]} : vector<8x7xf32> to vector<8x1xf32>
    %265 = vector.broadcast %264 : vector<8x1xf32> to vector<8x256xf32>
    %266 = arith.mulf %263, %265 : vector<8x256xf32>
    %267 = arith.addf %262, %266 : vector<8x256xf32>
    %cst_21 = arith.constant dense<0.000000e+00> : vector<8xf32>
    %268 = vector.multi_reduction <add>, %267, %cst_21 [1] : vector<8x256xf32> to vector<8xf32>
    %269 = vector.shape_cast %268 : vector<8xf32> to vector<8x1xf32>
    %270 = arith.mulf %267, %267 : vector<8x256xf32>
    %cst_22 = arith.constant dense<0.000000e+00> : vector<8xf32>
    %271 = vector.multi_reduction <add>, %270, %cst_22 [1] : vector<8x256xf32> to vector<8xf32>
    %272 = vector.shape_cast %271 : vector<8xf32> to vector<8x1xf32>
    %c4_i32_23 = arith.constant 4 : i32
    %273 = tpu.dynamic_rotate %269 by %c4_i32_23 dim 0 : vector<8x1xf32>, i32 -> vector<8x1xf32>
    %274 = arith.addf %269, %273 : vector<8x1xf32>
    %cst_24 = arith.constant 0.001953125 : f32
    %275 = vector.broadcast %cst_24 : f32 to vector<8x1xf32>
    %276 = arith.mulf %274, %275 : vector<8x1xf32>
    %c4_i32_25 = arith.constant 4 : i32
    %277 = tpu.dynamic_rotate %272 by %c4_i32_25 dim 0 : vector<8x1xf32>, i32 -> vector<8x1xf32>
    %278 = arith.addf %272, %277 : vector<8x1xf32>
    %cst_26 = arith.constant 0.001953125 : f32
    %279 = vector.broadcast %cst_26 : f32 to vector<8x1xf32>
    %280 = arith.mulf %278, %279 : vector<8x1xf32>
    %281 = arith.mulf %276, %276 : vector<8x1xf32>
    %282 = arith.subf %280, %281 : vector<8x1xf32>
    %283 = vector.extract_strided_slice %2 {offsets = [0, 1], sizes = [8, 1], strides = [1, 1]} : vector<8x8xf32> to vector<8x1xf32>
    %cst_27 = arith.constant 9.99999974E-6 : f32
    %284 = vector.broadcast %cst_27 : f32 to vector<8x1xf32>
    %285 = arith.addf %282, %284 : vector<8x1xf32>
    %286 = math.rsqrt %285 : vector<8x1xf32>
    %287 = arith.mulf %283, %286 : vector<8x1xf32>
    %288 = vector.extract_strided_slice %2 {offsets = [0, 5], sizes = [8, 1], strides = [1, 1]} : vector<8x8xf32> to vector<8x1xf32>
    %289 = arith.mulf %276, %287 : vector<8x1xf32>
    %290 = arith.subf %288, %289 : vector<8x1xf32>
    %291 = vector.broadcast %287 : vector<8x1xf32> to vector<8x256xf32>
    %292 = arith.mulf %267, %291 : vector<8x256xf32>
    %293 = vector.broadcast %290 : vector<8x1xf32> to vector<8x256xf32>
    %294 = arith.addf %292, %293 : vector<8x256xf32>
    %c1 = arith.constant 1 : index
    %c0_28 = arith.constant 0 : index
    %c0_29 = arith.constant 0 : index
    %295 = vector.load %arg2[%c1, %c0_28, %c0_29] : memref<2x8x25xf32, #tpu.memory_space<vmem>>, vector<1x8x25xf32>
    %296 = vector.shape_cast %295 : vector<1x8x25xf32> to vector<8x25xf32>
    %cst_30 = arith.constant 0.000000e+00 : f32
    %297 = vector.broadcast %cst_30 : f32 to vector<8x256xf32>
    %c34_i32_31 = arith.constant 34 : i32
    %298 = tpu.dynamic_rotate %294 by %c34_i32_31 dim 1 : vector<8x256xf32>, i32 -> vector<8x256xf32>
    %299 = vector.extract_strided_slice %1 {offsets = [0, 0], sizes = [1, 256], strides = [1, 1]} : vector<25x256xf32> to vector<1x256xf32>
    %300 = vector.broadcast %299 : vector<1x256xf32> to vector<8x256xf32>
    %301 = arith.mulf %298, %300 : vector<8x256xf32>
    %302 = vector.extract_strided_slice %296 {offsets = [0, 0], sizes = [8, 1], strides = [1, 1]} : vector<8x25xf32> to vector<8x1xf32>
    %303 = vector.broadcast %302 : vector<8x1xf32> to vector<8x256xf32>
    %304 = arith.mulf %301, %303 : vector<8x256xf32>
    %305 = arith.addf %297, %304 : vector<8x256xf32>
    %c33_i32_32 = arith.constant 33 : i32
    %306 = tpu.dynamic_rotate %294 by %c33_i32_32 dim 1 : vector<8x256xf32>, i32 -> vector<8x256xf32>
    %307 = vector.extract_strided_slice %1 {offsets = [1, 0], sizes = [1, 256], strides = [1, 1]} : vector<25x256xf32> to vector<1x256xf32>
    %308 = vector.broadcast %307 : vector<1x256xf32> to vector<8x256xf32>
    %309 = arith.mulf %306, %308 : vector<8x256xf32>
    %310 = vector.extract_strided_slice %296 {offsets = [0, 1], sizes = [8, 1], strides = [1, 1]} : vector<8x25xf32> to vector<8x1xf32>
    %311 = vector.broadcast %310 : vector<8x1xf32> to vector<8x256xf32>
    %312 = arith.mulf %309, %311 : vector<8x256xf32>
    %313 = arith.addf %305, %312 : vector<8x256xf32>
    %c32_i32_33 = arith.constant 32 : i32
    %314 = tpu.dynamic_rotate %294 by %c32_i32_33 dim 1 : vector<8x256xf32>, i32 -> vector<8x256xf32>
    %315 = vector.extract_strided_slice %1 {offsets = [2, 0], sizes = [1, 256], strides = [1, 1]} : vector<25x256xf32> to vector<1x256xf32>
    %316 = vector.broadcast %315 : vector<1x256xf32> to vector<8x256xf32>
    %317 = arith.mulf %314, %316 : vector<8x256xf32>
    %318 = vector.extract_strided_slice %296 {offsets = [0, 2], sizes = [8, 1], strides = [1, 1]} : vector<8x25xf32> to vector<8x1xf32>
    %319 = vector.broadcast %318 : vector<8x1xf32> to vector<8x256xf32>
    %320 = arith.mulf %317, %319 : vector<8x256xf32>
    %321 = arith.addf %313, %320 : vector<8x256xf32>
    %c31_i32_34 = arith.constant 31 : i32
    %322 = tpu.dynamic_rotate %294 by %c31_i32_34 dim 1 : vector<8x256xf32>, i32 -> vector<8x256xf32>
    %323 = vector.extract_strided_slice %1 {offsets = [3, 0], sizes = [1, 256], strides = [1, 1]} : vector<25x256xf32> to vector<1x256xf32>
    %324 = vector.broadcast %323 : vector<1x256xf32> to vector<8x256xf32>
    %325 = arith.mulf %322, %324 : vector<8x256xf32>
    %326 = vector.extract_strided_slice %296 {offsets = [0, 3], sizes = [8, 1], strides = [1, 1]} : vector<8x25xf32> to vector<8x1xf32>
    %327 = vector.broadcast %326 : vector<8x1xf32> to vector<8x256xf32>
    %328 = arith.mulf %325, %327 : vector<8x256xf32>
    %329 = arith.addf %321, %328 : vector<8x256xf32>
    %c30_i32_35 = arith.constant 30 : i32
    %330 = tpu.dynamic_rotate %294 by %c30_i32_35 dim 1 : vector<8x256xf32>, i32 -> vector<8x256xf32>
    %331 = vector.extract_strided_slice %1 {offsets = [4, 0], sizes = [1, 256], strides = [1, 1]} : vector<25x256xf32> to vector<1x256xf32>
    %332 = vector.broadcast %331 : vector<1x256xf32> to vector<8x256xf32>
    %333 = arith.mulf %330, %332 : vector<8x256xf32>
    %334 = vector.extract_strided_slice %296 {offsets = [0, 4], sizes = [8, 1], strides = [1, 1]} : vector<8x25xf32> to vector<8x1xf32>
    %335 = vector.broadcast %334 : vector<8x1xf32> to vector<8x256xf32>
    %336 = arith.mulf %333, %335 : vector<8x256xf32>
    %337 = arith.addf %329, %336 : vector<8x256xf32>
    %c18_i32_36 = arith.constant 18 : i32
    %338 = tpu.dynamic_rotate %294 by %c18_i32_36 dim 1 : vector<8x256xf32>, i32 -> vector<8x256xf32>
    %339 = vector.extract_strided_slice %1 {offsets = [5, 0], sizes = [1, 256], strides = [1, 1]} : vector<25x256xf32> to vector<1x256xf32>
    %340 = vector.broadcast %339 : vector<1x256xf32> to vector<8x256xf32>
    %341 = arith.mulf %338, %340 : vector<8x256xf32>
    %342 = vector.extract_strided_slice %296 {offsets = [0, 5], sizes = [8, 1], strides = [1, 1]} : vector<8x25xf32> to vector<8x1xf32>
    %343 = vector.broadcast %342 : vector<8x1xf32> to vector<8x256xf32>
    %344 = arith.mulf %341, %343 : vector<8x256xf32>
    %345 = arith.addf %337, %344 : vector<8x256xf32>
    %c17_i32_37 = arith.constant 17 : i32
    %346 = tpu.dynamic_rotate %294 by %c17_i32_37 dim 1 : vector<8x256xf32>, i32 -> vector<8x256xf32>
    %347 = vector.extract_strided_slice %1 {offsets = [6, 0], sizes = [1, 256], strides = [1, 1]} : vector<25x256xf32> to vector<1x256xf32>
    %348 = vector.broadcast %347 : vector<1x256xf32> to vector<8x256xf32>
    %349 = arith.mulf %346, %348 : vector<8x256xf32>
    %350 = vector.extract_strided_slice %296 {offsets = [0, 6], sizes = [8, 1], strides = [1, 1]} : vector<8x25xf32> to vector<8x1xf32>
    %351 = vector.broadcast %350 : vector<8x1xf32> to vector<8x256xf32>
    %352 = arith.mulf %349, %351 : vector<8x256xf32>
    %353 = arith.addf %345, %352 : vector<8x256xf32>
    %c16_i32_38 = arith.constant 16 : i32
    %354 = tpu.dynamic_rotate %294 by %c16_i32_38 dim 1 : vector<8x256xf32>, i32 -> vector<8x256xf32>
    %355 = vector.extract_strided_slice %1 {offsets = [7, 0], sizes = [1, 256], strides = [1, 1]} : vector<25x256xf32> to vector<1x256xf32>
    %356 = vector.broadcast %355 : vector<1x256xf32> to vector<8x256xf32>
    %357 = arith.mulf %354, %356 : vector<8x256xf32>
    %358 = vector.extract_strided_slice %296 {offsets = [0, 7], sizes = [8, 1], strides = [1, 1]} : vector<8x25xf32> to vector<8x1xf32>
    %359 = vector.broadcast %358 : vector<8x1xf32> to vector<8x256xf32>
    %360 = arith.mulf %357, %359 : vector<8x256xf32>
    %361 = arith.addf %353, %360 : vector<8x256xf32>
    %c15_i32_39 = arith.constant 15 : i32
    %362 = tpu.dynamic_rotate %294 by %c15_i32_39 dim 1 : vector<8x256xf32>, i32 -> vector<8x256xf32>
    %363 = vector.extract_strided_slice %1 {offsets = [8, 0], sizes = [1, 256], strides = [1, 1]} : vector<25x256xf32> to vector<1x256xf32>
    %364 = vector.broadcast %363 : vector<1x256xf32> to vector<8x256xf32>
    %365 = arith.mulf %362, %364 : vector<8x256xf32>
    %366 = vector.extract_strided_slice %296 {offsets = [0, 8], sizes = [8, 1], strides = [1, 1]} : vector<8x25xf32> to vector<8x1xf32>
    %367 = vector.broadcast %366 : vector<8x1xf32> to vector<8x256xf32>
    %368 = arith.mulf %365, %367 : vector<8x256xf32>
    %369 = arith.addf %361, %368 : vector<8x256xf32>
    %c14_i32_40 = arith.constant 14 : i32
    %370 = tpu.dynamic_rotate %294 by %c14_i32_40 dim 1 : vector<8x256xf32>, i32 -> vector<8x256xf32>
    %371 = vector.extract_strided_slice %1 {offsets = [9, 0], sizes = [1, 256], strides = [1, 1]} : vector<25x256xf32> to vector<1x256xf32>
    %372 = vector.broadcast %371 : vector<1x256xf32> to vector<8x256xf32>
    %373 = arith.mulf %370, %372 : vector<8x256xf32>
    %374 = vector.extract_strided_slice %296 {offsets = [0, 9], sizes = [8, 1], strides = [1, 1]} : vector<8x25xf32> to vector<8x1xf32>
    %375 = vector.broadcast %374 : vector<8x1xf32> to vector<8x256xf32>
    %376 = arith.mulf %373, %375 : vector<8x256xf32>
    %377 = arith.addf %369, %376 : vector<8x256xf32>
    %c2_i32_41 = arith.constant 2 : i32
    %378 = tpu.dynamic_rotate %294 by %c2_i32_41 dim 1 : vector<8x256xf32>, i32 -> vector<8x256xf32>
    %379 = vector.extract_strided_slice %1 {offsets = [10, 0], sizes = [1, 256], strides = [1, 1]} : vector<25x256xf32> to vector<1x256xf32>
    %380 = vector.broadcast %379 : vector<1x256xf32> to vector<8x256xf32>
    %381 = arith.mulf %378, %380 : vector<8x256xf32>
    %382 = vector.extract_strided_slice %296 {offsets = [0, 10], sizes = [8, 1], strides = [1, 1]} : vector<8x25xf32> to vector<8x1xf32>
    %383 = vector.broadcast %382 : vector<8x1xf32> to vector<8x256xf32>
    %384 = arith.mulf %381, %383 : vector<8x256xf32>
    %385 = arith.addf %377, %384 : vector<8x256xf32>
    %c1_i32_42 = arith.constant 1 : i32
    %386 = tpu.dynamic_rotate %294 by %c1_i32_42 dim 1 : vector<8x256xf32>, i32 -> vector<8x256xf32>
    %387 = vector.extract_strided_slice %1 {offsets = [11, 0], sizes = [1, 256], strides = [1, 1]} : vector<25x256xf32> to vector<1x256xf32>
    %388 = vector.broadcast %387 : vector<1x256xf32> to vector<8x256xf32>
    %389 = arith.mulf %386, %388 : vector<8x256xf32>
    %390 = vector.extract_strided_slice %296 {offsets = [0, 11], sizes = [8, 1], strides = [1, 1]} : vector<8x25xf32> to vector<8x1xf32>
    %391 = vector.broadcast %390 : vector<8x1xf32> to vector<8x256xf32>
    %392 = arith.mulf %389, %391 : vector<8x256xf32>
    %393 = arith.addf %385, %392 : vector<8x256xf32>
    %394 = vector.extract_strided_slice %296 {offsets = [0, 12], sizes = [8, 1], strides = [1, 1]} : vector<8x25xf32> to vector<8x1xf32>
    %395 = vector.broadcast %394 : vector<8x1xf32> to vector<8x256xf32>
    %396 = arith.mulf %294, %395 : vector<8x256xf32>
    %397 = arith.addf %393, %396 : vector<8x256xf32>
    %c255_i32_43 = arith.constant 255 : i32
    %398 = tpu.dynamic_rotate %294 by %c255_i32_43 dim 1 : vector<8x256xf32>, i32 -> vector<8x256xf32>
    %399 = vector.extract_strided_slice %1 {offsets = [13, 0], sizes = [1, 256], strides = [1, 1]} : vector<25x256xf32> to vector<1x256xf32>
    %400 = vector.broadcast %399 : vector<1x256xf32> to vector<8x256xf32>
    %401 = arith.mulf %398, %400 : vector<8x256xf32>
    %402 = vector.extract_strided_slice %296 {offsets = [0, 13], sizes = [8, 1], strides = [1, 1]} : vector<8x25xf32> to vector<8x1xf32>
    %403 = vector.broadcast %402 : vector<8x1xf32> to vector<8x256xf32>
    %404 = arith.mulf %401, %403 : vector<8x256xf32>
    %405 = arith.addf %397, %404 : vector<8x256xf32>
    %c254_i32_44 = arith.constant 254 : i32
    %406 = tpu.dynamic_rotate %294 by %c254_i32_44 dim 1 : vector<8x256xf32>, i32 -> vector<8x256xf32>
    %407 = vector.extract_strided_slice %1 {offsets = [14, 0], sizes = [1, 256], strides = [1, 1]} : vector<25x256xf32> to vector<1x256xf32>
    %408 = vector.broadcast %407 : vector<1x256xf32> to vector<8x256xf32>
    %409 = arith.mulf %406, %408 : vector<8x256xf32>
    %410 = vector.extract_strided_slice %296 {offsets = [0, 14], sizes = [8, 1], strides = [1, 1]} : vector<8x25xf32> to vector<8x1xf32>
    %411 = vector.broadcast %410 : vector<8x1xf32> to vector<8x256xf32>
    %412 = arith.mulf %409, %411 : vector<8x256xf32>
    %413 = arith.addf %405, %412 : vector<8x256xf32>
    %c242_i32_45 = arith.constant 242 : i32
    %414 = tpu.dynamic_rotate %294 by %c242_i32_45 dim 1 : vector<8x256xf32>, i32 -> vector<8x256xf32>
    %415 = vector.extract_strided_slice %1 {offsets = [15, 0], sizes = [1, 256], strides = [1, 1]} : vector<25x256xf32> to vector<1x256xf32>
    %416 = vector.broadcast %415 : vector<1x256xf32> to vector<8x256xf32>
    %417 = arith.mulf %414, %416 : vector<8x256xf32>
    %418 = vector.extract_strided_slice %296 {offsets = [0, 15], sizes = [8, 1], strides = [1, 1]} : vector<8x25xf32> to vector<8x1xf32>
    %419 = vector.broadcast %418 : vector<8x1xf32> to vector<8x256xf32>
    %420 = arith.mulf %417, %419 : vector<8x256xf32>
    %421 = arith.addf %413, %420 : vector<8x256xf32>
    %c241_i32_46 = arith.constant 241 : i32
    %422 = tpu.dynamic_rotate %294 by %c241_i32_46 dim 1 : vector<8x256xf32>, i32 -> vector<8x256xf32>
    %423 = vector.extract_strided_slice %1 {offsets = [16, 0], sizes = [1, 256], strides = [1, 1]} : vector<25x256xf32> to vector<1x256xf32>
    %424 = vector.broadcast %423 : vector<1x256xf32> to vector<8x256xf32>
    %425 = arith.mulf %422, %424 : vector<8x256xf32>
    %426 = vector.extract_strided_slice %296 {offsets = [0, 16], sizes = [8, 1], strides = [1, 1]} : vector<8x25xf32> to vector<8x1xf32>
    %427 = vector.broadcast %426 : vector<8x1xf32> to vector<8x256xf32>
    %428 = arith.mulf %425, %427 : vector<8x256xf32>
    %429 = arith.addf %421, %428 : vector<8x256xf32>
    %c240_i32_47 = arith.constant 240 : i32
    %430 = tpu.dynamic_rotate %294 by %c240_i32_47 dim 1 : vector<8x256xf32>, i32 -> vector<8x256xf32>
    %431 = vector.extract_strided_slice %1 {offsets = [17, 0], sizes = [1, 256], strides = [1, 1]} : vector<25x256xf32> to vector<1x256xf32>
    %432 = vector.broadcast %431 : vector<1x256xf32> to vector<8x256xf32>
    %433 = arith.mulf %430, %432 : vector<8x256xf32>
    %434 = vector.extract_strided_slice %296 {offsets = [0, 17], sizes = [8, 1], strides = [1, 1]} : vector<8x25xf32> to vector<8x1xf32>
    %435 = vector.broadcast %434 : vector<8x1xf32> to vector<8x256xf32>
    %436 = arith.mulf %433, %435 : vector<8x256xf32>
    %437 = arith.addf %429, %436 : vector<8x256xf32>
    %c239_i32_48 = arith.constant 239 : i32
    %438 = tpu.dynamic_rotate %294 by %c239_i32_48 dim 1 : vector<8x256xf32>, i32 -> vector<8x256xf32>
    %439 = vector.extract_strided_slice %1 {offsets = [18, 0], sizes = [1, 256], strides = [1, 1]} : vector<25x256xf32> to vector<1x256xf32>
    %440 = vector.broadcast %439 : vector<1x256xf32> to vector<8x256xf32>
    %441 = arith.mulf %438, %440 : vector<8x256xf32>
    %442 = vector.extract_strided_slice %296 {offsets = [0, 18], sizes = [8, 1], strides = [1, 1]} : vector<8x25xf32> to vector<8x1xf32>
    %443 = vector.broadcast %442 : vector<8x1xf32> to vector<8x256xf32>
    %444 = arith.mulf %441, %443 : vector<8x256xf32>
    %445 = arith.addf %437, %444 : vector<8x256xf32>
    %c238_i32_49 = arith.constant 238 : i32
    %446 = tpu.dynamic_rotate %294 by %c238_i32_49 dim 1 : vector<8x256xf32>, i32 -> vector<8x256xf32>
    %447 = vector.extract_strided_slice %1 {offsets = [19, 0], sizes = [1, 256], strides = [1, 1]} : vector<25x256xf32> to vector<1x256xf32>
    %448 = vector.broadcast %447 : vector<1x256xf32> to vector<8x256xf32>
    %449 = arith.mulf %446, %448 : vector<8x256xf32>
    %450 = vector.extract_strided_slice %296 {offsets = [0, 19], sizes = [8, 1], strides = [1, 1]} : vector<8x25xf32> to vector<8x1xf32>
    %451 = vector.broadcast %450 : vector<8x1xf32> to vector<8x256xf32>
    %452 = arith.mulf %449, %451 : vector<8x256xf32>
    %453 = arith.addf %445, %452 : vector<8x256xf32>
    %c226_i32_50 = arith.constant 226 : i32
    %454 = tpu.dynamic_rotate %294 by %c226_i32_50 dim 1 : vector<8x256xf32>, i32 -> vector<8x256xf32>
    %455 = vector.extract_strided_slice %1 {offsets = [20, 0], sizes = [1, 256], strides = [1, 1]} : vector<25x256xf32> to vector<1x256xf32>
    %456 = vector.broadcast %455 : vector<1x256xf32> to vector<8x256xf32>
    %457 = arith.mulf %454, %456 : vector<8x256xf32>
    %458 = vector.extract_strided_slice %296 {offsets = [0, 20], sizes = [8, 1], strides = [1, 1]} : vector<8x25xf32> to vector<8x1xf32>
    %459 = vector.broadcast %458 : vector<8x1xf32> to vector<8x256xf32>
    %460 = arith.mulf %457, %459 : vector<8x256xf32>
    %461 = arith.addf %453, %460 : vector<8x256xf32>
    %c225_i32_51 = arith.constant 225 : i32
    %462 = tpu.dynamic_rotate %294 by %c225_i32_51 dim 1 : vector<8x256xf32>, i32 -> vector<8x256xf32>
    %463 = vector.extract_strided_slice %1 {offsets = [21, 0], sizes = [1, 256], strides = [1, 1]} : vector<25x256xf32> to vector<1x256xf32>
    %464 = vector.broadcast %463 : vector<1x256xf32> to vector<8x256xf32>
    %465 = arith.mulf %462, %464 : vector<8x256xf32>
    %466 = vector.extract_strided_slice %296 {offsets = [0, 21], sizes = [8, 1], strides = [1, 1]} : vector<8x25xf32> to vector<8x1xf32>
    %467 = vector.broadcast %466 : vector<8x1xf32> to vector<8x256xf32>
    %468 = arith.mulf %465, %467 : vector<8x256xf32>
    %469 = arith.addf %461, %468 : vector<8x256xf32>
    %c224_i32_52 = arith.constant 224 : i32
    %470 = tpu.dynamic_rotate %294 by %c224_i32_52 dim 1 : vector<8x256xf32>, i32 -> vector<8x256xf32>
    %471 = vector.extract_strided_slice %1 {offsets = [22, 0], sizes = [1, 256], strides = [1, 1]} : vector<25x256xf32> to vector<1x256xf32>
    %472 = vector.broadcast %471 : vector<1x256xf32> to vector<8x256xf32>
    %473 = arith.mulf %470, %472 : vector<8x256xf32>
    %474 = vector.extract_strided_slice %296 {offsets = [0, 22], sizes = [8, 1], strides = [1, 1]} : vector<8x25xf32> to vector<8x1xf32>
    %475 = vector.broadcast %474 : vector<8x1xf32> to vector<8x256xf32>
    %476 = arith.mulf %473, %475 : vector<8x256xf32>
    %477 = arith.addf %469, %476 : vector<8x256xf32>
    %c223_i32_53 = arith.constant 223 : i32
    %478 = tpu.dynamic_rotate %294 by %c223_i32_53 dim 1 : vector<8x256xf32>, i32 -> vector<8x256xf32>
    %479 = vector.extract_strided_slice %1 {offsets = [23, 0], sizes = [1, 256], strides = [1, 1]} : vector<25x256xf32> to vector<1x256xf32>
    %480 = vector.broadcast %479 : vector<1x256xf32> to vector<8x256xf32>
    %481 = arith.mulf %478, %480 : vector<8x256xf32>
    %482 = vector.extract_strided_slice %296 {offsets = [0, 23], sizes = [8, 1], strides = [1, 1]} : vector<8x25xf32> to vector<8x1xf32>
    %483 = vector.broadcast %482 : vector<8x1xf32> to vector<8x256xf32>
    %484 = arith.mulf %481, %483 : vector<8x256xf32>
    %485 = arith.addf %477, %484 : vector<8x256xf32>
    %c222_i32_54 = arith.constant 222 : i32
    %486 = tpu.dynamic_rotate %294 by %c222_i32_54 dim 1 : vector<8x256xf32>, i32 -> vector<8x256xf32>
    %487 = vector.extract_strided_slice %1 {offsets = [24, 0], sizes = [1, 256], strides = [1, 1]} : vector<25x256xf32> to vector<1x256xf32>
    %488 = vector.broadcast %487 : vector<1x256xf32> to vector<8x256xf32>
    %489 = arith.mulf %486, %488 : vector<8x256xf32>
    %490 = vector.extract_strided_slice %296 {offsets = [0, 24], sizes = [8, 1], strides = [1, 1]} : vector<8x25xf32> to vector<8x1xf32>
    %491 = vector.broadcast %490 : vector<8x1xf32> to vector<8x256xf32>
    %492 = arith.mulf %489, %491 : vector<8x256xf32>
    %493 = arith.addf %485, %492 : vector<8x256xf32>
    %cst_55 = arith.constant dense<0.000000e+00> : vector<8xf32>
    %494 = vector.multi_reduction <add>, %493, %cst_55 [1] : vector<8x256xf32> to vector<8xf32>
    %495 = vector.shape_cast %494 : vector<8xf32> to vector<8x1xf32>
    %496 = arith.mulf %493, %493 : vector<8x256xf32>
    %cst_56 = arith.constant dense<0.000000e+00> : vector<8xf32>
    %497 = vector.multi_reduction <add>, %496, %cst_56 [1] : vector<8x256xf32> to vector<8xf32>
    %498 = vector.shape_cast %497 : vector<8xf32> to vector<8x1xf32>
    %c4_i32_57 = arith.constant 4 : i32
    %499 = tpu.dynamic_rotate %495 by %c4_i32_57 dim 0 : vector<8x1xf32>, i32 -> vector<8x1xf32>
    %500 = arith.addf %495, %499 : vector<8x1xf32>
    %cst_58 = arith.constant 0.001953125 : f32
    %501 = vector.broadcast %cst_58 : f32 to vector<8x1xf32>
    %502 = arith.mulf %500, %501 : vector<8x1xf32>
    %c4_i32_59 = arith.constant 4 : i32
    %503 = tpu.dynamic_rotate %498 by %c4_i32_59 dim 0 : vector<8x1xf32>, i32 -> vector<8x1xf32>
    %504 = arith.addf %498, %503 : vector<8x1xf32>
    %cst_60 = arith.constant 0.001953125 : f32
    %505 = vector.broadcast %cst_60 : f32 to vector<8x1xf32>
    %506 = arith.mulf %504, %505 : vector<8x1xf32>
    %507 = arith.mulf %502, %502 : vector<8x1xf32>
    %508 = arith.subf %506, %507 : vector<8x1xf32>
    %509 = vector.extract_strided_slice %2 {offsets = [0, 2], sizes = [8, 1], strides = [1, 1]} : vector<8x8xf32> to vector<8x1xf32>
    %cst_61 = arith.constant 9.99999974E-6 : f32
    %510 = vector.broadcast %cst_61 : f32 to vector<8x1xf32>
    %511 = arith.addf %508, %510 : vector<8x1xf32>
    %512 = math.rsqrt %511 : vector<8x1xf32>
    %513 = arith.mulf %509, %512 : vector<8x1xf32>
    %514 = vector.extract_strided_slice %2 {offsets = [0, 6], sizes = [8, 1], strides = [1, 1]} : vector<8x8xf32> to vector<8x1xf32>
    %515 = arith.mulf %502, %513 : vector<8x1xf32>
    %516 = arith.subf %514, %515 : vector<8x1xf32>
    %517 = vector.broadcast %513 : vector<8x1xf32> to vector<8x256xf32>
    %518 = arith.mulf %493, %517 : vector<8x256xf32>
    %519 = vector.broadcast %516 : vector<8x1xf32> to vector<8x256xf32>
    %520 = arith.addf %518, %519 : vector<8x256xf32>
    %cst_62 = arith.constant 0.000000e+00 : f32
    %521 = vector.broadcast %cst_62 : f32 to vector<8x256xf32>
    %522 = arith.maximumf %520, %521 : vector<8x256xf32>
    %c1_63 = arith.constant 1 : index
    %c0_64 = arith.constant 0 : index
    %c0_65 = arith.constant 0 : index
    %523 = vector.load %arg3[%c1_63, %c0_64, %c0_65] : memref<2x8x7xf32, #tpu.memory_space<vmem>>, vector<1x8x7xf32>
    %524 = vector.shape_cast %523 : vector<1x8x7xf32> to vector<8x7xf32>
    %cst_66 = arith.constant 0.000000e+00 : f32
    %525 = vector.broadcast %cst_66 : f32 to vector<8x256xf32>
    %c5_i32_67 = arith.constant 5 : i32
    %526 = tpu.dynamic_rotate %522 by %c5_i32_67 dim 0 : vector<8x256xf32>, i32 -> vector<8x256xf32>
    %527 = vector.extract_strided_slice %524 {offsets = [0, 0], sizes = [8, 1], strides = [1, 1]} : vector<8x7xf32> to vector<8x1xf32>
    %528 = vector.broadcast %527 : vector<8x1xf32> to vector<8x256xf32>
    %529 = arith.mulf %526, %528 : vector<8x256xf32>
    %530 = arith.addf %525, %529 : vector<8x256xf32>
    %c6_i32_68 = arith.constant 6 : i32
    %531 = tpu.dynamic_rotate %522 by %c6_i32_68 dim 0 : vector<8x256xf32>, i32 -> vector<8x256xf32>
    %532 = vector.extract_strided_slice %524 {offsets = [0, 1], sizes = [8, 1], strides = [1, 1]} : vector<8x7xf32> to vector<8x1xf32>
    %533 = vector.broadcast %532 : vector<8x1xf32> to vector<8x256xf32>
    %534 = arith.mulf %531, %533 : vector<8x256xf32>
    %535 = arith.addf %530, %534 : vector<8x256xf32>
    %c7_i32_69 = arith.constant 7 : i32
    %536 = tpu.dynamic_rotate %522 by %c7_i32_69 dim 0 : vector<8x256xf32>, i32 -> vector<8x256xf32>
    %537 = vector.extract_strided_slice %524 {offsets = [0, 2], sizes = [8, 1], strides = [1, 1]} : vector<8x7xf32> to vector<8x1xf32>
    %538 = vector.broadcast %537 : vector<8x1xf32> to vector<8x256xf32>
    %539 = arith.mulf %536, %538 : vector<8x256xf32>
    %540 = arith.addf %535, %539 : vector<8x256xf32>
    %541 = vector.extract_strided_slice %524 {offsets = [0, 3], sizes = [8, 1], strides = [1, 1]} : vector<8x7xf32> to vector<8x1xf32>
    %542 = vector.broadcast %541 : vector<8x1xf32> to vector<8x256xf32>
    %543 = arith.mulf %522, %542 : vector<8x256xf32>
    %544 = arith.addf %540, %543 : vector<8x256xf32>
    %c1_i32_70 = arith.constant 1 : i32
    %545 = tpu.dynamic_rotate %522 by %c1_i32_70 dim 0 : vector<8x256xf32>, i32 -> vector<8x256xf32>
    %546 = vector.extract_strided_slice %524 {offsets = [0, 4], sizes = [8, 1], strides = [1, 1]} : vector<8x7xf32> to vector<8x1xf32>
    %547 = vector.broadcast %546 : vector<8x1xf32> to vector<8x256xf32>
    %548 = arith.mulf %545, %547 : vector<8x256xf32>
    %549 = arith.addf %544, %548 : vector<8x256xf32>
    %c2_i32_71 = arith.constant 2 : i32
    %550 = tpu.dynamic_rotate %522 by %c2_i32_71 dim 0 : vector<8x256xf32>, i32 -> vector<8x256xf32>
    %551 = vector.extract_strided_slice %524 {offsets = [0, 5], sizes = [8, 1], strides = [1, 1]} : vector<8x7xf32> to vector<8x1xf32>
    %552 = vector.broadcast %551 : vector<8x1xf32> to vector<8x256xf32>
    %553 = arith.mulf %550, %552 : vector<8x256xf32>
    %554 = arith.addf %549, %553 : vector<8x256xf32>
    %c3_i32_72 = arith.constant 3 : i32
    %555 = tpu.dynamic_rotate %522 by %c3_i32_72 dim 0 : vector<8x256xf32>, i32 -> vector<8x256xf32>
    %556 = vector.extract_strided_slice %524 {offsets = [0, 6], sizes = [8, 1], strides = [1, 1]} : vector<8x7xf32> to vector<8x1xf32>
    %557 = vector.broadcast %556 : vector<8x1xf32> to vector<8x256xf32>
    %558 = arith.mulf %555, %557 : vector<8x256xf32>
    %559 = arith.addf %554, %558 : vector<8x256xf32>
    %cst_73 = arith.constant dense<0.000000e+00> : vector<8xf32>
    %560 = vector.multi_reduction <add>, %559, %cst_73 [1] : vector<8x256xf32> to vector<8xf32>
    %561 = vector.shape_cast %560 : vector<8xf32> to vector<8x1xf32>
    %562 = arith.mulf %559, %559 : vector<8x256xf32>
    %cst_74 = arith.constant dense<0.000000e+00> : vector<8xf32>
    %563 = vector.multi_reduction <add>, %562, %cst_74 [1] : vector<8x256xf32> to vector<8xf32>
    %564 = vector.shape_cast %563 : vector<8xf32> to vector<8x1xf32>
    %c4_i32_75 = arith.constant 4 : i32
    %565 = tpu.dynamic_rotate %561 by %c4_i32_75 dim 0 : vector<8x1xf32>, i32 -> vector<8x1xf32>
    %566 = arith.addf %561, %565 : vector<8x1xf32>
    %cst_76 = arith.constant 0.001953125 : f32
    %567 = vector.broadcast %cst_76 : f32 to vector<8x1xf32>
    %568 = arith.mulf %566, %567 : vector<8x1xf32>
    %c4_i32_77 = arith.constant 4 : i32
    %569 = tpu.dynamic_rotate %564 by %c4_i32_77 dim 0 : vector<8x1xf32>, i32 -> vector<8x1xf32>
    %570 = arith.addf %564, %569 : vector<8x1xf32>
    %cst_78 = arith.constant 0.001953125 : f32
    %571 = vector.broadcast %cst_78 : f32 to vector<8x1xf32>
    %572 = arith.mulf %570, %571 : vector<8x1xf32>
    %573 = arith.mulf %568, %568 : vector<8x1xf32>
    %574 = arith.subf %572, %573 : vector<8x1xf32>
    %575 = vector.extract_strided_slice %2 {offsets = [0, 3], sizes = [8, 1], strides = [1, 1]} : vector<8x8xf32> to vector<8x1xf32>
    %cst_79 = arith.constant 9.99999974E-6 : f32
    %576 = vector.broadcast %cst_79 : f32 to vector<8x1xf32>
    %577 = arith.addf %574, %576 : vector<8x1xf32>
    %578 = math.rsqrt %577 : vector<8x1xf32>
    %579 = arith.mulf %575, %578 : vector<8x1xf32>
    %580 = vector.extract_strided_slice %2 {offsets = [0, 7], sizes = [8, 1], strides = [1, 1]} : vector<8x8xf32> to vector<8x1xf32>
    %581 = arith.mulf %568, %579 : vector<8x1xf32>
    %582 = arith.subf %580, %581 : vector<8x1xf32>
    %583 = vector.broadcast %579 : vector<8x1xf32> to vector<8x256xf32>
    %584 = arith.mulf %559, %583 : vector<8x256xf32>
    %585 = vector.broadcast %582 : vector<8x1xf32> to vector<8x256xf32>
    %586 = arith.addf %584, %585 : vector<8x256xf32>
    %c0_80 = arith.constant 0 : index
    %c0_81 = arith.constant 0 : index
    %587 = vector.load %arg6[%c0_80, %c0_81] : memref<8x256xf32, #tpu.memory_space<vmem>>, vector<8x256xf32>
    tpu.vector_store %arg6[%c0_80, %c0_81], %586 {strides = array<i32>} : memref<8x256xf32, #tpu.memory_space<vmem>>, vector<8x256xf32>,
    return
  }
  func.func @transform_0(%arg0: i32) -> (i32, i32) {
    %c0_i32 = arith.constant 0 : i32
    %c0_i32_0 = arith.constant 0 : i32
    %c0_i32_1 = arith.constant 0 : i32
    return %c0_i32, %c0_i32_0 : i32, i32
  }
  func.func @transform_1(%arg0: i32) -> (i32, i32, i32) {
    %c0_i32 = arith.constant 0 : i32
    %c0_i32_0 = arith.constant 0 : i32
    %c0_i32_1 = arith.constant 0 : i32
    %c0_i32_2 = arith.constant 0 : i32
    return %c0_i32, %c0_i32_0, %c0_i32_1 : i32, i32, i32
  }
  func.func @transform_2(%arg0: i32) -> (i32, i32, i32) {
    %c0_i32 = arith.constant 0 : i32
    %c0_i32_0 = arith.constant 0 : i32
    %c0_i32_1 = arith.constant 0 : i32
    %c0_i32_2 = arith.constant 0 : i32
    return %c0_i32, %c0_i32_0, %c0_i32_1 : i32, i32, i32
  }
  func.func @transform_3(%arg0: i32) -> (i32, i32) {
    %c0_i32 = arith.constant 0 : i32
    %c0_i32_0 = arith.constant 0 : i32
    %c0_i32_1 = arith.constant 0 : i32
    return %c0_i32, %c0_i32_0 : i32, i32
  }
  func.func @transform_4(%arg0: i32) -> (i32, i32) {
    %c0_i32 = arith.constant 0 : i32
    %c0_i32_0 = arith.constant 0 : i32
    %c0_i32_1 = arith.constant 0 : i32
    return %c0_i32, %c0_i32_0 : i32, i32
  }
  func.func @transform_5(%arg0: i32) -> (i32, i32) {
    %c0_i32 = arith.constant 0 : i32
    %c0_i32_0 = arith.constant 0 : i32
    %c0_i32_1 = arith.constant 0 : i32
    return %c0_i32, %c0_i32_0 : i32, i32
  }
}

</mosaic_0001>

<bundles_post_ra>
// kernel: tpu_custom_call.1
= control target key start
LH: loop header
LB: loop body
LE: loop exit
PB: predicated region body
PF: predicated region fallthrough
CT: control target
= control target key end

     0   :  { %10 = vsyncpa [#allocation3], 0  ;;  %s2916_s0 = inlined_call_operand.vmem [shape: f32[8,256], index: 0, kind: input, shape index: {}]   ;;  %s2917_s1 = inlined_call_operand.vmem [shape: f32[2,8,25], index: 1, kind: input, shape index: {}]   ;;  %s2918_s2 = inlined_call_operand.vmem [shape: f32[2,8,7], index: 2, kind: input, shape index: {}]   ;;  %s2919_s3 = inlined_call_operand.vmem [shape: f32[8,8], index: 3, kind: input, shape index: {}]   ;;  %s2920_s4 = inlined_call_operand.hbm [shape: f32[25,256], index: 4, kind: input, shape index: {}]   ;;  %s2921_s5 = inlined_call_operand.hbm [shape: f32[8,256], index: 5, kind: output, shape index: {}]  }
   0x1   :  { %11 = vsyncpa [#allocation4], 0  ;;  %s1584_s18 = smov [#allocation2]   ;;  %s1536_s22 = scalar_lea.hbm %s2920_s4, 1024 }
   0x2   :  { %s25_s19 = sshll.u32 %s1584_s18, 4  ;;  %p1537_p0 = scmp.ne.s32.totalorder %s2920_s4, %s1536_s22  ;;  %s26_s19 = int_to_ptr.vmem [resolvable:$true] %s25_s19 }
   0x3   :  { %p1540_p1 = scmp.lt.u32.totalorder %s1536_s22, %s2920_s4 }
   0x5   :  { %p1542_p2 = pnand %p1540_p1, %p1537_p0 }
   0x7   :  { %1545 = shalt.err (!%p1542_p2)
}
   0x8   :  { %s1546_s27 = scalar_lea.vmem %s26_s19, 1024  ;;  %p1551_p4 = scmp.lt.s32.totalorder %s26_s19, %s26_s19 }
   0x9   :  { %p1547_p3 = scmp.ne.s32.totalorder %s26_s19, %s1546_s27  ;;  %p1552_p5 = scmp.lt.s32.totalorder %s1546_s27, %s1546_s27 }
   0xb   :  { %p1553_p6 = por %p1552_p5, %p1551_p4 }
   0xd   :  { %p1554_p7 = pnand %p1553_p6, %p1547_p3 }
   0xf   :  { %1557 = shalt.err (!%p1554_p7)
}
  0x10   :  { %s1585_s28 = smov 256   ;;  %s1586_s29 = smov 16  }
  0x11   :  { %31 = dma.hbm_to_vmem [thread:$0]  %s2920_s4, 1024, %s26_s19, [#allocation3], %s1585_s28, %s1585_s28, %s1586_s29  }
  0x12   :  { %1580 = dma.done.wait [#allocation3], 1024  }
  0x13   :  { %1581 = vsyncadd [#allocation3], 4294966272  ;;  %v2943_v0 = vmov 2   ;;  %v2945_v1 = vmov 0   ;;  %v1690_v2 = vld [vmem:[%s2917_s1] sm:$0xff]  ;;  %s1589_s4 = smov 34  }
  0x14   :  { %1456 = vset.pattern.permute.xlu1 %v2943_v0  ;;  %1454 = vset.pattern.permute.xlu0 %v2945_v1  ;;  %v1697_v3 = vld [vmem:[%s2916_s0] sm:$0xff]  ;;  %v2953_v4 = vmov 1   ;;  %v1706_v5 = vld [vmem:[%s2916_s0 + $0x8] sm:$0xff]  ;;  %v2933_v6 = vmov 14   ;;  %s1592_s13 = smov 33   ;;  %v2951_v7 = vmov 3  }
  0x15   :  { %118 = vperm.xlu1 %1456, %v1690_v2   ;;  %68 = vperm.xlu0 %1454, %v1690_v2   ;;  %3015 = vst [vmem:[#allocation8_spill] sm:$0xff] %v1697_v3  ;;  %3016 = vst [vmem:[#allocation9_spill] sm:$0xff] %v1706_v5  ;;  %s1594_s0 = smov 32   ;;  %v2949_v8 = vmov 4   ;;  %v2941_v9 = vmov 5   ;;  %s1597_s14 = smov 31  }
  0x16   :  { %v2947_v10 = vmov 6   ;;  %s1599_s15 = smov 30   ;;  %v2939_v11 = vmov 7   ;;  %v2938_v12 = vmov 8   ;;  %s1602_s16 = smov 18   ;;  %v2937_v13 = vmov 9  }
  0x17   :  { %v2936_v14 = vmov 10   ;;  %s1605_s17 = smov 17   ;;  %v2935_v15 = vmov 11   ;;  %v2934_v16 = vmov 12   ;;  %v2932_v17 = vmov 13   ;;  %s1609_s18 = smov 15  }
  0x18   :  { %s1610_s19 = smov 127   ;;  %v2930_v18 = vmov 16   ;;  %s1612_s20 = smov 126   ;;  %v2929_v19 = vmov 17   ;;  %v2928_v20 = vmov 18   ;;  %v2927_v21 = vmov 19  }
  0x19   :  { %47 = vrot.lane.b32.xlu1 %v1697_v3, %s1589_s4  ;;  %1455 = vset.pattern.permute.xlu0 %v2953_v4  ;;  %s1613_s21 = smov 14   ;;  %s1615_s22 = smov 2   ;;  %v2926_v22 = vmov 20   ;;  %v2925_v23 = vmov 21   ;;  %v2931_v24 = vmov 15   ;;  %v2924_v25 = vmov 22  }
  0x1a   :  { %93 = vperm.xlu0 %1455, %v1690_v2   ;;  %1468 = vset.pattern.permute.xlu1 %v2933_v6  ;;  %s1617_s23 = smov 1   ;;  %v2923_v26 = vmov 23   ;;  %s1624_s24 = smov 114   ;;  %v2922_v27 = vmov 24  }
  0x1b   :  { %s1626_s25 = smov 94   ;;  %s1627_s26 = smov 113  }
  0x1c   :  { %s1628_s27 = smov 112   ;;  %s1629_s28 = smov 111  }
  0x1d   :  { %49 = vrot.lane.b32.xlu1 %v1706_v5, %s1589_s4  ;;  %s1630_s30 = smov 110   ;;  %s1631_s6 = smov 98  }
  0x1e   :  { %75 = vrot.lane.b32.xlu0 %v1697_v3, %s1592_s13  ;;  %s1632_s7 = smov 97   ;;  %s2995_s8 = smov 96  }
  0x1f   :  { %1457 = vset.pattern.permute.xlu0 %v2951_v7  ;;  %s2993_s9 = smov 95  }
  0x21   :  { %77 = vrot.lane.b32.xlu1 %v1706_v5, %s1592_s13 }
  0x22   :  { %143 = vperm.xlu0 %1457, %v1690_v2  }
  0x25   :  { %100 = vrot.lane.b32.xlu1 %v1697_v3, %s1594_s0 }
  0x26   :  { %1458 = vset.pattern.permute.xlu0 %v2949_v8 }
  0x27   :  { %168 = vperm.xlu0 %1458, %v1690_v2  }
  0x29   :  { %102 = vrot.lane.b32.xlu1 %v1706_v5, %s1594_s0 }
  0x2b   :  { %1459 = vset.pattern.permute.xlu0 %v2941_v9 }
  0x2c   :  { %193 = vperm.xlu0 %1459, %v1690_v2  }
  0x2d   :  { %125 = vrot.lane.b32.xlu1 %v1697_v3, %s1597_s14 }
  0x30   :  { %1460 = vset.pattern.permute.xlu0 %v2947_v10 }
  0x31   :  { %127 = vrot.lane.b32.xlu1 %v1706_v5, %s1597_s14  ;;  %218 = vperm.xlu0 %1460, %v1690_v2  }
  0x35   :  { %150 = vrot.lane.b32.xlu1 %v1697_v3, %s1599_s15  ;;  %1461 = vset.pattern.permute.xlu0 %v2939_v11 }
  0x36   :  { %243 = vperm.xlu0 %1461, %v1690_v2  }
  0x39   :  { %152 = vrot.lane.b32.xlu1 %v1706_v5, %s1599_s15 }
  0x3a   :  { %1462 = vset.pattern.permute.xlu0 %v2938_v12 }
  0x3b   :  { %268 = vperm.xlu0 %1462, %v1690_v2  }
  0x3d   :  { %175 = vrot.lane.b32.xlu1 %v1697_v3, %s1602_s16 }
  0x3f   :  { %1463 = vset.pattern.permute.xlu0 %v2937_v13 }
  0x40   :  { %293 = vperm.xlu0 %1463, %v1690_v2  }
  0x41   :  { %177 = vrot.lane.b32.xlu1 %v1706_v5, %s1602_s16 }
  0x44   :  { %1464 = vset.pattern.permute.xlu0 %v2936_v14 }
  0x45   :  { %200 = vrot.lane.b32.xlu1 %v1697_v3, %s1605_s17  ;;  %318 = vperm.xlu0 %1464, %v1690_v2  }
  0x49   :  { %202 = vrot.lane.b32.xlu1 %v1706_v5, %s1605_s17  ;;  %1465 = vset.pattern.permute.xlu0 %v2935_v15 }
  0x4a   :  { %343 = vperm.xlu0 %1465, %v1690_v2  }
  0x4d   :  { %225 = vrot.lane.b32.xlu1 %v1697_v3, %s1586_s29 }
  0x4e   :  { %1466 = vset.pattern.permute.xlu0 %v2934_v16 }
  0x4f   :  { %351 = vperm.xlu0 %1466, %v1690_v2  }
  0x51   :  { %227 = vrot.lane.b32.xlu1 %v1706_v5, %s1586_s29 }
  0x53   :  { %1467 = vset.pattern.permute.xlu0 %v2932_v17  ;;  %v38_v17 = vld [vmem:[#allocation2 + $0x8] sm:$0xff] }
  0x54   :  { %376 = vperm.xlu0 %1467, %v1690_v2  }
  0x55   :  { %250 = vrot.lane.b32.xlu1 %v1697_v3, %s1609_s18 }
  0x58   :  { %360 = vrot.lane.b32.xlu0 %v1706_v5, %s1610_s19 }
  0x59   :  { %252 = vrot.lane.b32.xlu1 %v1706_v5, %s1609_s18  ;;  %1470 = vset.pattern.permute.xlu0 %v2930_v18 }
  0x5c   :  { %383 = vrot.lane.b32.xlu0 %v1697_v3, %s1612_s20 }
  0x5d   :  { %275 = vrot.lane.b32.xlu1 %v1697_v3, %s1613_s21 }
  0x60   :  { %451 = vperm.xlu0 %1470, %v1690_v2  }
  0x61   :  { %277 = vrot.lane.b32.xlu1 %v1706_v5, %s1613_s21 }
  0x64   :  { %1471 = vset.pattern.permute.xlu0 %v2929_v19 }
  0x65   :  { %300 = vrot.lane.b32.xlu1 %v1697_v3, %s1615_s22  ;;  %476 = vperm.xlu0 %1471, %v1690_v2  }
  0x69   :  { %302 = vrot.lane.b32.xlu1 %v1706_v5, %s1615_s22  ;;  %1472 = vset.pattern.permute.xlu0 %v2928_v20 }
  0x6a   :  { %501 = vperm.xlu0 %1472, %v1690_v2  }
  0x6d   :  { %325 = vrot.lane.b32.xlu1 %v1697_v3, %s1617_s23 }
  0x6e   :  { %1473 = vset.pattern.permute.xlu0 %v2927_v21 }
  0x6f   :  { %526 = vperm.xlu0 %1473, %v1690_v2  }
  0x71   :  { %327 = vrot.lane.b32.xlu1 %v1706_v5, %s1617_s23 }
  0x73   :  { %1474 = vset.pattern.permute.xlu0 %v2926_v22 }
  0x74   :  { %551 = vperm.xlu0 %1474, %v1690_v2  }
  0x75   :  { %401 = vperm.xlu1 %1468, %v1690_v2  }
  0x78   :  { %1475 = vset.pattern.permute.xlu0 %v2925_v23 }
  0x79   :  { %358 = vrot.lane.b32.xlu1 %v1697_v3, %s1610_s19  ;;  %576 = vperm.xlu0 %1475, %v1690_v2  }
  0x7a   :  { %1469 = vset.pattern.permute.xlu1 %v2931_v24  ;;  %v37_v24 = vld [vmem:[#allocation2] sm:$0xff] }
  0x7d   :  { %426 = vperm.xlu1 %1469, %v1690_v2   ;;  %1476 = vset.pattern.permute.xlu0 %v2924_v25 }
  0x7e   :  { %601 = vperm.xlu0 %1476, %v1690_v2  }
  0x81   :  { %385 = vrot.lane.b32.xlu1 %v1706_v5, %s1612_s20 }
  0x82   :  { %1477 = vset.pattern.permute.xlu0 %v2923_v26  ;;  %1479 = vset.pattern.permute.xlu1 %v2945_v1  ;;  %v51_v26 = vlaneseq }
  0x83   :  { %626 = vperm.xlu0 %1477, %v1690_v2  }
  0x84   :  { %v57_v23 = vshrl.u32 %v51_v26, 7  ;;  %v1928_v20 = vand.u32 127, %v51_v26 }
  0x85   :  { %408 = vrot.lane.b32.xlu1 %v1697_v3, %s1624_s24 }
  0x86   :  { %v1930_v19 = vsub.s32 0, %v57_v23  ;;  %v1932_v18 = vsub.s32 1, %v57_v23  ;;  %v1934_v6 = vsub.s32 2, %v57_v23  ;;  %vm79_vm0 = vcmp.lt.s32.totalorder %v1928_v20, 33 }
  0x87   :  { %1478 = vset.pattern.permute.xlu0 %v2922_v27  ;;  %v1939_v15 = vsub.s32 3, %v57_v23  ;;  %v1941_v14 = vsub.s32 4, %v57_v23  ;;  %vm53_vm1 = vcmp.lt.s32.totalorder %v1928_v20, 34  ;;  %vm104_vm2 = vcmp.lt.s32.totalorder %v1928_v20, 32 }
  0x88   :  { %651 = vperm.xlu0 %1478, %v1690_v2   ;;  %v1947_v26 = vrot.slane %v37_v24, %v1930_v19  ;;  %v1950_v12 = vrot.slane %v38_v17, %v1930_v19  ;;  %v1953_v11 = vrot.slane %v37_v24, %v1932_v18  ;;  %v1956_v9 = vrot.slane %v38_v17, %v1932_v18 }
  0x89   :  { %410 = vrot.lane.b32.xlu1 %v1706_v5, %s1624_s24  ;;  %3022 = vst [vmem:[#allocation15_spill] sm:$0xff] %v1941_v14  ;;  %v1960_v0 = vrot.slane %v37_v24, %v1934_v6  ;;  %v1963_v1 = vrot.slane %v38_v17, %v1934_v6  ;;  %vm129_vm3 = vcmp.lt.s32.totalorder %v1928_v20, 31  ;;  %v1974_v4 = vsub.s32 5, %v57_v23 }
  0x8a   :  { %3024 = vst [vmem:[#allocation17_spill] sm:$0xff] %v1947_v26  ;;  %3025 = vst [vmem:[#allocation18_spill] sm:$0xff] %v1950_v12  ;;  %vm154_vm4 = vcmp.lt.s32.totalorder %v1928_v20, 30  ;;  %vm179_vm5 = vcmp.lt.s32.totalorder %v1928_v20, 18  ;;  %vm204_vm6 = vcmp.lt.s32.totalorder %v1928_v20, 17  ;;  %vm229_vm7 = vcmp.lt.s32.totalorder %v1928_v20, 16 }
  0x8b   :  { %3026 = vst [vmem:[#allocation19_spill] sm:$0xff] %v1953_v11  ;;  %3027 = vst [vmem:[#allocation20_spill] sm:$0xff] %v1956_v9  ;;  %vm254_vm8 = vcmp.lt.s32.totalorder %v1928_v20, 15  ;;  %vm279_vm9 = vcmp.lt.s32.totalorder %v1928_v20, 14  ;;  %vm304_vm10 = vcmp.lt.s32.totalorder %v1928_v20, 2  ;;  %vm329_vm11 = vcmp.lt.s32.totalorder %v1928_v20, 1 }
  0x8c   :  { %633 = vrot.lane.b32.xlu0 %v1697_v3, %s1626_s25  ;;  %3028 = vst [vmem:[#allocation21_spill] sm:$0xff] %v1963_v1  ;;  %vm2976_vm12 = vcmp.lt.s32.totalorder %v1928_v20, 127  ;;  %vm2981_vm13 = vcmp.lt.s32.totalorder %v1928_v20, 126  ;;  %vm2983_vm14 = vcmp.lt.s32.totalorder %v1928_v20, 114  ;;  %vm2988_vm15 = vcmp.lt.s32.totalorder %v1928_v20, 113 }
  0x8d   :  { %433 = vrot.lane.b32.xlu1 %v1697_v3, %s1627_s26  ;;  %1481 = vset.pattern.permute.xlu0 %v2949_v8 }
  0x91   :  { %435 = vrot.lane.b32.xlu1 %v1706_v5, %s1627_s26 }
  0x94   :  { %v1818_v28 = vpop.permute.xlu1 %118  ;;  %v1878_v43 = vpop.permute.xlu0 %68 }
  0x95   :  { %458 = vrot.lane.b32.xlu1 %v1697_v3, %s1628_s27 }
  0x98   :  { %v1822_v29 = vpop.permute.xlu1 %47 }
  0x99   :  { %460 = vrot.lane.b32.xlu1 %v1706_v5, %s1628_s27  ;;  %v1884_v46 = vpop.permute.xlu0 %93 }
  0x9c   :  { %v1826_v30 = vpop.permute.xlu1 %49 }
  0x9d   :  { %483 = vrot.lane.b32.xlu1 %v1697_v3, %s1629_s28  ;;  %v76_v48 = vpop.permute.xlu0 %75 }
  0xa0   :  { %v1830_v31 = vpop.permute.xlu1 %77 }
  0xa1   :  { %485 = vrot.lane.b32.xlu1 %v1706_v5, %s1629_s28  ;;  %v1890_v50 = vpop.permute.xlu0 %143  ;;  %v80_v8 = vsel %vm79_vm0, %v76_v48, %v1830_v31  ;;  %v81_v7 = vsel %vm79_vm0, %v1830_v31, %v76_v48  ;;  %v54_v31 = vsel %vm53_vm1, %v1822_v29, %v1826_v30  ;;  %v55_v48 = vsel %vm53_vm1, %v1826_v30, %v1822_v29 }
  0xa4   :  { %v1834_v32 = vpop.permute.xlu1 %100 }
  0xa5   :  { %508 = vrot.lane.b32.xlu1 %v1697_v3, %s1630_s30 }
  0xa6   :  { %v1894_v52 = vpop.permute.xlu0 %168 }
  0xa8   :  { %v1838_v33 = vpop.permute.xlu1 %102 }
  0xa9   :  { %510 = vrot.lane.b32.xlu1 %v1706_v5, %s1630_s30 }
  0xab   :  { %v1898_v54 = vpop.permute.xlu0 %193 }
  0xac   :  { %v1842_v34 = vpop.permute.xlu1 %125 }
  0xad   :  { %533 = vrot.lane.b32.xlu1 %v1697_v3, %s1631_s6 }
  0xb0   :  { %v1846_v35 = vpop.permute.xlu1 %127  ;;  %v1902_v56 = vpop.permute.xlu0 %218 }
  0xb1   :  { %535 = vrot.lane.b32.xlu1 %v1706_v5, %s1631_s6 }
  0xb4   :  { %v1850_v36 = vpop.permute.xlu1 %150 }
  0xb5   :  { %558 = vrot.lane.b32.xlu1 %v1697_v3, %s1632_s7  ;;  %v1906_v58 = vpop.permute.xlu0 %243 }
  0xb8   :  { %v1854_v37 = vpop.permute.xlu1 %152 }
  0xb9   :  { %560 = vrot.lane.b32.xlu1 %v1706_v5, %s1632_s7 }
  0xba   :  { %v1910_v60 = vpop.permute.xlu0 %268 }
  0xbc   :  { %v1858_v38 = vpop.permute.xlu1 %175 }
  0xbd   :  { %583 = vrot.lane.b32.xlu1 %v1697_v3, %s2995_s8 }
  0xbf   :  { %v1914_v62 = vpop.permute.xlu0 %293 }
  0xc0   :  { %v1862_v39 = vpop.permute.xlu1 %177 }
  0xc1   :  { %585 = vrot.lane.b32.xlu1 %v1706_v5, %s2995_s8  ;;  %s1635_s8 = smov 4  }
  0xc4   :  { %v1866_v40 = vpop.permute.xlu1 %200  ;;  %v1920_v27 = vpop.permute.xlu0 %318 }
  0xc5   :  { %608 = vrot.lane.b32.xlu1 %v1697_v3, %s2993_s9  ;;  %v105_v3 = vsel %vm104_vm2, %v1834_v32, %v1838_v33 }
  0xc8   :  { %v1870_v41 = vpop.permute.xlu1 %202 }
  0xc9   :  { %610 = vrot.lane.b32.xlu1 %v1706_v5, %s2993_s9  ;;  %v1924_v22 = vpop.permute.xlu0 %343 }
  0xcc   :  { %v1874_v42 = vpop.permute.xlu1 %225 }
  0xcd   :  { %635 = vrot.lane.b32.xlu1 %v1706_v5, %s1626_s25  ;;  %v90_v5 = vmul.f32 %v1953_v11, %v81_v7  ;;  %v2015_v7 = vrot.slane %v37_v24, %v1974_v4  ;;  %v64_v11 = vmul.f32 %v1947_v26, %v55_v48 }
  0xce   :  { %v1943_v13 = vpop.permute.xlu0 %351 }
  0xcf   :  { %3023 = vst [vmem:[#allocation16_spill] sm:$0xff] %v1943_v13  ;;  %v91_v13 = vmul.f32 %v1956_v9, %v80_v8  ;;  %v2018_v8 = vrot.slane %v38_v17, %v1974_v4  ;;  %v2020_v9 = vsub.s32 7, %v57_v23 }
  0xd0   :  { %v1880_v44 = vpop.permute.xlu1 %227 }
  0xd1   :  { %v97_v48 = vmul.f32 %v1884_v46, %v91_v13  ;;  %v2056_v13 = vld [vmem:[#allocation2 + $0x10] sm:$0xff] }
  0xd3   :  { %v2009_v29 = vpop.permute.xlu0 %376 }
  0xd4   :  { %v1882_v45 = vpop.permute.xlu1 %250  ;;  %3033 = vst [vmem:[#allocation26_spill] sm:$0xff] %v2009_v29  ;;  %v116_v29 = vmul.f32 %v1963_v1, %v105_v3 }
  0xd6   :  { %v122_v1 = vmul.f32 %v1818_v28, %v116_v29 }
  0xd8   :  { %v1886_v47 = vpop.permute.xlu1 %252 }
  0xdc   :  { %v1888_v49 = vpop.permute.xlu1 %275 }
  0xe0   :  { %v1892_v51 = vpop.permute.xlu1 %277 }
  0xe4   :  { %v1896_v53 = vpop.permute.xlu1 %300 }
  0xe8   :  { %v1900_v55 = vpop.permute.xlu1 %302 }
  0xec   :  { %v1904_v57 = vpop.permute.xlu1 %325 }
  0xf0   :  { %v1908_v59 = vpop.permute.xlu1 %327 }
  0xf4   :  { %v1912_v61 = vpop.permute.xlu1 %401 }
  0xf5   :  { %3017 = vst [vmem:[#allocation10_spill] sm:$0xff] %v1912_v61  ;;  %v1980_v61 = vrot.slane %v38_v17, %v1939_v15 }
  0xf7   :  { %3031 = vst [vmem:[#allocation24_spill] sm:$0xff] %v1980_v61 }
  0xf8   :  { %v1916_v63 = vpop.permute.xlu1 %358 }
  0xfc   :  { %v1918_v2 = vpop.permute.xlu1 %426 }
  0xfd   :  { %3018 = vst [vmem:[#allocation11_spill] sm:$0xff] %v1918_v2  ;;  %v1977_v2 = vrot.slane %v37_v24, %v1939_v15 }
  0xff   :  { %3030 = vst [vmem:[#allocation23_spill] sm:$0xff] %v1977_v2 }
 0x100   :  { %v1922_v25 = vpop.permute.xlu1 %385 }
 0x101   :  { %3019 = vst [vmem:[#allocation12_spill] sm:$0xff] %v1922_v25  ;;  %v106_v25 = vsel %vm104_vm2, %v1838_v33, %v1834_v32  ;;  %v130_v32 = vsel %vm129_vm3, %v1842_v34, %v1846_v35  ;;  %v131_v33 = vsel %vm129_vm3, %v1846_v35, %v1842_v34  ;;  %v155_v34 = vsel %vm154_vm4, %v1850_v36, %v1854_v37 }
 0x102   :  { %v141_v3 = vmul.f32 %v1980_v61, %v130_v32  ;;  %v71_v35 = vmul.f32 %v1878_v43, %v64_v11  ;;  %v2064_v32 = vrot.slane %v38_v17, %v2020_v9  ;;  %v2066_v61 = vpop.permute.xlu0 %360  ;;  %v181_v11 = vsel %vm179_vm5, %v1862_v39, %v1858_v38 }
 0x104   :  { %v1926_v21 = vpop.permute.xlu1 %408 }
 0x105   :  { %3020 = vst [vmem:[#allocation13_spill] sm:$0xff] %v1926_v21  ;;  %v1995_v21 = vrot.slane %v38_v17, %v1941_v14 }
 0x107   :  { %3032 = vst [vmem:[#allocation25_spill] sm:$0xff] %v1995_v21 }
 0x108   :  { %v1936_v16 = vpop.permute.xlu1 %410 }
 0x109   :  { %3021 = vst [vmem:[#allocation14_spill] sm:$0xff] %v1936_v16  ;;  %v1997_v16 = vsub.s32 6, %v57_v23 }
 0x10b   :  { %v2036_v23 = vrot.slane %v37_v24, %v1997_v16 }
 0x10c   :  { %v1965_v10 = vpop.permute.xlu1 %433 }
 0x10d   :  { %3029 = vst [vmem:[#allocation22_spill] sm:$0xff] %v1965_v10  ;;  %v1984_v10 = vrot.slane %v37_v24, %v1941_v14  ;;  %v65_v14 = vmul.f32 %v1950_v12, %v54_v31  ;;  %v96_v31 = vmul.f32 %v1884_v46, %v90_v5  ;;  %v2041_v12 = vrot.slane %v38_v17, %v1997_v16 }
 0x10e   :  { %v156_v5 = vsel %vm154_vm4, %v1854_v37, %v1850_v36  ;;  %v180_v36 = vsel %vm179_vm5, %v1858_v38, %v1862_v39  ;;  %v166_v17 = vmul.f32 %v1995_v21, %v155_v34  ;;  %v147_v38 = vmul.f32 %v1890_v50, %v141_v3 }
 0x10f   :  { %v72_v46 = vmul.f32 %v1878_v43, %v65_v14  ;;  %v165_v14 = vmul.f32 %v1984_v10, %v156_v5  ;;  %v98_v43 = vadd.f32 %v96_v31, %v71_v35  ;;  %v190_v39 = vmul.f32 %v2015_v7, %v181_v11  ;;  %v2101_v31 = vpop.permute.xlu0 %383 }
 0x110   :  { %v2011_v30 = vpop.permute.xlu1 %435  ;;  %v191_v34 = vmul.f32 %v2018_v8, %v180_v36  ;;  %v205_v5 = vsel %vm204_vm6, %v1866_v40, %v1870_v41  ;;  %v206_v21 = vsel %vm204_vm6, %v1870_v41, %v1866_v40  ;;  %v172_v35 = vmul.f32 %v1894_v52, %v166_v17 }
 0x111   :  { %3034 = vst [vmem:[#allocation27_spill] sm:$0xff] %v2011_v30  ;;  %v115_v30 = vmul.f32 %v1960_v0, %v106_v25  ;;  %v140_v25 = vmul.f32 %v1977_v2, %v131_v33  ;;  %v2061_v33 = vrot.slane %v37_v24, %v2020_v9  ;;  %v2080_v24 = vld [vmem:[#allocation2 + $0x18] sm:$0xff]  ;;  %v99_v29 = vadd.f32 %v97_v48, %v72_v46 }
 0x112   :  { %v171_v3 = vmul.f32 %v1894_v52, %v165_v14  ;;  %v230_v46 = vsel %vm229_vm7, %v1874_v42, %v1880_v44  ;;  %v215_v41 = vmul.f32 %v2036_v23, %v206_v21  ;;  %v2124_v36 = vrot.slane %v2056_v13, %v1932_v18 }
 0x113   :  { %v121_v2 = vmul.f32 %v1818_v28, %v115_v30  ;;  %v2085_v28 = vrot.slane %v2056_v13, %v1930_v19  ;;  %v146_v30 = vmul.f32 %v1890_v50, %v140_v25  ;;  %v124_v25 = vadd.f32 %v122_v1, %v99_v29 }
 0x114   :  { %v2044_v26 = vpop.permute.xlu1 %458  ;;  %v2105_v50 = vrot.slane %v2080_v24, %v1930_v19  ;;  %v231_v1 = vsel %vm229_vm7, %v1880_v44, %v1874_v42  ;;  %v2128_v52 = vrot.slane %v2080_v24, %v1932_v18  ;;  %v196_v17 = vmul.f32 %v1898_v54, %v190_v39  ;;  %v2132_v44 = vpop.permute.xlu0 %451 }
 0x115   :  { %v123_v48 = vadd.f32 %v121_v2, %v98_v43  ;;  %v216_v2 = vmul.f32 %v2041_v12, %v205_v5  ;;  %v149_v14 = vadd.f32 %v147_v38, %v124_v25  ;;  %v197_v42 = vmul.f32 %v1898_v54, %v191_v34 }
 0x116   :  { %3035 = vst [vmem:[#allocation28_spill] sm:$0xff] %v2128_v52  ;;  %v240_v21 = vmul.f32 %v2061_v33, %v231_v1  ;;  %v241_v43 = vmul.f32 %v2064_v32, %v230_v46  ;;  %v255_v29 = vsel %vm254_vm8, %v1882_v45, %v1886_v47  ;;  %v2147_v54 = vrot.slane %v2056_v13, %v1934_v6 }
 0x117   :  { %v148_v11 = vadd.f32 %v146_v30, %v123_v48  ;;  %v256_v30 = vsel %vm254_vm8, %v1886_v47, %v1882_v45  ;;  %v174_v39 = vadd.f32 %v172_v35, %v149_v14  ;;  %v221_v5 = vmul.f32 %v1902_v56, %v215_v41 }
 0x118   :  { %v2087_v37 = vpop.permute.xlu1 %460  ;;  %3036 = vst [vmem:[#allocation29_spill] sm:$0xff] %v2147_v54  ;;  %v222_v48 = vmul.f32 %v1902_v56, %v216_v2  ;;  %v280_v25 = vsel %vm279_vm9, %v1888_v49, %v1892_v51  ;;  %v281_v45 = vsel %vm279_vm9, %v1892_v51, %v1888_v49  ;;  %v265_v47 = vmul.f32 %v2085_v28, %v256_v30  ;;  %v2168_v56 = vpop.permute.xlu0 %476 }
 0x119   :  { %v173_v38 = vadd.f32 %v171_v3, %v148_v11  ;;  %v266_v3 = vmul.f32 %v2105_v50, %v255_v29  ;;  %v2165_v35 = vrot.slane %v2080_v24, %v1934_v6  ;;  %v199_v1 = vadd.f32 %v197_v42, %v174_v39 }
 0x11a   :  { %v246_v41 = vmul.f32 %v1906_v58, %v240_v21  ;;  %v247_v2 = vmul.f32 %v1906_v58, %v241_v43  ;;  %v290_v49 = vmul.f32 %v2124_v36, %v281_v45  ;;  %v291_v51 = vmul.f32 %v2128_v52, %v280_v25 }
 0x11b   :  { %3037 = vst [vmem:[#allocation30_spill] sm:$0xff] %v2165_v35  ;;  %v198_v46 = vadd.f32 %v196_v17, %v173_v38  ;;  %v305_v11 = vsel %vm304_vm10, %v1896_v53, %v1900_v55  ;;  %v306_v14 = vsel %vm304_vm10, %v1900_v55, %v1896_v53  ;;  %v224_v21 = vadd.f32 %v222_v48, %v199_v1 }
 0x11c   :  { %v2118_v40 = vpop.permute.xlu1 %483  ;;  %v2186_v58 = vrot.slane %v2056_v13, %v1939_v15  ;;  %v2190_v43 = vrot.slane %v2080_v24, %v1939_v15  ;;  %v271_v29 = vmul.f32 %v1910_v60, %v265_v47  ;;  %v272_v30 = vmul.f32 %v1910_v60, %v266_v3  ;;  %v2202_v38 = vpop.permute.xlu0 %501 }
 0x11d   :  { %v223_v42 = vadd.f32 %v221_v5, %v198_v46  ;;  %v330_v53 = vsel %vm329_vm11, %v1904_v57, %v1908_v59  ;;  %v331_v55 = vsel %vm329_vm11, %v1908_v59, %v1904_v57  ;;  %v315_v39 = vmul.f32 %v2147_v54, %v306_v14  ;;  %v2234_v14 = vld [vmem:[#allocation2 + $0x20] sm:$0xff] }
 0x11e   :  { %3038 = vst [vmem:[#allocation31_spill] sm:$0xff] %v2186_v58  ;;  %3039 = vst [vmem:[#allocation32_spill] sm:$0xff] %v2190_v43  ;;  %v316_v5 = vmul.f32 %v2165_v35, %v305_v11  ;;  %v249_v25 = vadd.f32 %v247_v2, %v224_v21  ;;  %v296_v60 = vmul.f32 %v1914_v62, %v290_v49 }
 0x11f   :  { %v248_v48 = vadd.f32 %v246_v41, %v223_v42  ;;  %v297_v45 = vmul.f32 %v1914_v62, %v291_v51  ;;  %v340_v3 = vmul.f32 %v2186_v58, %v331_v55  ;;  %v341_v46 = vmul.f32 %v2190_v43, %v330_v53  ;;  %v2236_v42 = vld [vmem:[#allocation2 + $0x28] sm:$0xff] }
 0x120   :  { %v2149_v34 = vpop.permute.xlu1 %485  ;;  %v2215_v57 = vrot.slane %v2056_v13, %v1974_v4  ;;  %v274_v1 = vadd.f32 %v272_v30, %v249_v25  ;;  %v2219_v41 = vrot.slane %v2080_v24, %v1974_v4  ;;  %v2222_v62 = vpop.permute.xlu0 %526  ;;  %v321_v2 = vmul.f32 %v1920_v27, %v315_v39 }
 0x121   :  { %v273_v59 = vadd.f32 %v271_v29, %v248_v48  ;;  %v322_v49 = vmul.f32 %v1920_v27, %v316_v5  ;;  %v2228_v51 = vrot.slane %v2056_v13, %v1997_v16  ;;  %v2232_v11 = vrot.slane %v2080_v24, %v1997_v16 }
 0x122   :  { %3040 = vst [vmem:[#allocation33_spill] sm:$0xff] %v2215_v57  ;;  %3041 = vst [vmem:[#allocation34_spill] sm:$0xff] %v2219_v41  ;;  %v299_v29 = vadd.f32 %v297_v45, %v274_v1  ;;  %v2241_v30 = vrot.slane %v2056_v13, %v2020_v9  ;;  %v346_v53 = vmul.f32 %v1924_v22, %v340_v3  ;;  %v3044_v3 = vld [vmem:[#allocation12_spill] sm:$0xff] }
 0x123   :  { %3042 = vst [vmem:[#allocation35_spill] sm:$0xff] %v2228_v51  ;;  %3043 = vst [vmem:[#allocation36_spill] sm:$0xff] %v2232_v11  ;;  %v298_v21 = vadd.f32 %v296_v60, %v273_v59  ;;  %v347_v55 = vmul.f32 %v1924_v22, %v341_v46  ;;  %v363_v39 = vsel %vm2976_vm12, %v1916_v63, %v2066_v61  ;;  %v3045_v1 = vld [vmem:[#allocation8_spill] sm:$0xff] }
 0x124   :  { %v2182_v17 = vpop.permute.xlu1 %508  ;;  %v364_v5 = vsel %vm2976_vm12, %v2066_v61, %v1916_v63  ;;  %v2257_v13 = vrot.slane %v2080_v24, %v2020_v9  ;;  %v2262_v48 = vrot.slane %v2234_v14, %v1930_v19  ;;  %v2266_v22 = vrot.slane %v2236_v42, %v1930_v19  ;;  %v2268_v25 = vpop.permute.xlu0 %551 }
 0x125   :  { %v323_v60 = vadd.f32 %v321_v2, %v298_v21  ;;  %v324_v45 = vadd.f32 %v322_v49, %v299_v29  ;;  %v388_v61 = vsel %vm2981_vm13, %v2101_v31, %v3044_v3  ;;  %v389_v63 = vsel %vm2981_vm13, %v3044_v3, %v2101_v31  ;;  %v3046_v2 = vld [vmem:[#allocation16_spill] sm:$0xff]  ;;  %v3047_v21 = vld [vmem:[#allocation9_spill] sm:$0xff] }
 0x126   :  { %v373_v24 = vmul.f32 %v2215_v57, %v363_v39  ;;  %v374_v46 = vmul.f32 %v2219_v41, %v364_v5  ;;  %vm462_vm12 = vcmp.lt.s32.totalorder %v1928_v20, 112  ;;  %v2283_v19 = vrot.slane %v2234_v14, %v1932_v18  ;;  %v3048_v5 = vld [vmem:[#allocation14_spill] sm:$0xff]  ;;  %v3049_v3 = vld [vmem:[#allocation13_spill] sm:$0xff] }
 0x127   :  { %v354_v49 = vmul.f32 %v3046_v2, %v3045_v1  ;;  %v355_v29 = vmul.f32 %v3046_v2, %v3047_v21  ;;  %v348_v43 = vadd.f32 %v346_v53, %v323_v60  ;;  %v349_v58 = vadd.f32 %v347_v55, %v324_v45  ;;  %v3050_v45 = vld [vmem:[#allocation26_spill] sm:$0xff]  ;;  %v3051_v2 = vld [vmem:[#allocation27_spill] sm:$0xff] }
 0x128   :  { %v2208_v47 = vpop.permute.xlu1 %510  ;;  %v398_v31 = vmul.f32 %v2228_v51, %v388_v61  ;;  %v399_v39 = vmul.f32 %v2232_v11, %v389_v63  ;;  %v413_v41 = vsel %vm2983_vm14, %v3049_v3, %v3048_v5  ;;  %v414_v57 = vsel %vm2983_vm14, %v3048_v5, %v3049_v3  ;;  %v2299_v1 = vpop.permute.xlu0 %576  ;;  %v3052_v21 = vld [vmem:[#allocation22_spill] sm:$0xff] }
 0x129   :  { %v2303_v53 = vrot.slane %v2236_v42, %v1932_v18  ;;  %vm2989_vm13 = vcmp.lt.s32.totalorder %v1928_v20, 111  ;;  %v2308_v55 = vrot.slane %v2234_v14, %v1934_v6  ;;  %v2312_v60 = vrot.slane %v2236_v42, %v1934_v6  ;;  %v3053_v51 = vld [vmem:[#allocation10_spill] sm:$0xff] }
 0x12a   :  { %v379_v61 = vmul.f32 %v3050_v45, %v373_v24  ;;  %v380_v63 = vmul.f32 %v3050_v45, %v374_v46  ;;  %v438_v18 = vsel %vm2988_vm15, %v3052_v21, %v3051_v2  ;;  %v439_v5 = vsel %vm2988_vm15, %v3051_v2, %v3052_v21 }
 0x12b   :  { %v423_v11 = vmul.f32 %v2241_v30, %v413_v41  ;;  %v424_v6 = vmul.f32 %v2257_v13, %v414_v57  ;;  %vm2990_vm14 = vcmp.lt.s32.totalorder %v1928_v20, 110  ;;  %v2329_v24 = vrot.slane %v2234_v14, %v1939_v15 }
 0x12c   :  { %v2243_v27 = vpop.permute.xlu1 %533  ;;  %v356_v46 = vadd.f32 %v354_v49, %v348_v43  ;;  %v357_v45 = vadd.f32 %v355_v29, %v349_v58  ;;  %v404_v35 = vmul.f32 %v3053_v51, %v398_v31  ;;  %v405_v54 = vmul.f32 %v3053_v51, %v399_v39  ;;  %v2348_v29 = vpop.permute.xlu0 %601  ;;  %v3055_v31 = vld [vmem:[#allocation11_spill] sm:$0xff] }
 0x12d   :  { %v448_v52 = vmul.f32 %v2262_v48, %v438_v18  ;;  %v449_v2 = vmul.f32 %v2266_v22, %v439_v5  ;;  %v463_v57 = vsel %vm462_vm12, %v2044_v26, %v2087_v37  ;;  %v464_v41 = vsel %vm462_vm12, %v2087_v37, %v2044_v26 }
 0x12e   :  { %v381_v43 = vadd.f32 %v379_v61, %v356_v46  ;;  %v382_v58 = vadd.f32 %v380_v63, %v357_v45  ;;  %v2345_v49 = vrot.slane %v2236_v42, %v1939_v15  ;;  %vm537_vm15 = vcmp.lt.s32.totalorder %v1928_v20, 98  ;;  %v3056_v63 = vld [vmem:[#allocation15_spill] sm:$0xff] }
 0x12f   :  { %v429_v39 = vmul.f32 %v3055_v31, %v423_v11  ;;  %v430_v21 = vmul.f32 %v3055_v31, %v424_v6  ;;  %v488_v26 = vsel %vm2989_vm13, %v2118_v40, %v2149_v34  ;;  %v489_v15 = vsel %vm2989_vm13, %v2149_v34, %v2118_v40 }
 0x130   :  { %v536_v59 = vpop.permute.xlu1 %535  ;;  %3054 = vst [vmem:[#allocation12_spill] sm:$0xff] %v2345_v49  ;;  %v473_v37 = vmul.f32 %v2283_v19, %v463_v57  ;;  %v474_v61 = vmul.f32 %v2303_v53, %v464_v41  ;;  %v2364_v18 = vrot.slane %v2234_v14, %v3056_v63  ;;  %v2368_v11 = vrot.slane %v2236_v42, %v3056_v63 }
 0x131   :  { %v406_v5 = vadd.f32 %v404_v35, %v381_v43  ;;  %v407_v6 = vadd.f32 %v405_v54, %v382_v58  ;;  %v454_v46 = vmul.f32 %v2132_v44, %v448_v52  ;;  %v455_v45 = vmul.f32 %v2132_v44, %v449_v2 }
 0x132   :  { %3057 = vst [vmem:[#allocation8_spill] sm:$0xff] %v2364_v18  ;;  %3058 = vst [vmem:[#allocation16_spill] sm:$0xff] %v2368_v11  ;;  %v498_v40 = vmul.f32 %v2308_v55, %v488_v26  ;;  %v499_v34 = vmul.f32 %v2312_v60, %v489_v15  ;;  %v513_v57 = vsel %vm2990_vm14, %v2182_v17, %v2208_v47  ;;  %vm2991_vm13 = vcmp.lt.s32.totalorder %v1928_v20, 97 }
 0x133   :  { %v514_v41 = vsel %vm2990_vm14, %v2208_v47, %v2182_v17  ;;  %v431_v54 = vadd.f32 %v429_v39, %v406_v5  ;;  %v432_v43 = vadd.f32 %v430_v21, %v407_v6  ;;  %v2385_v52 = vrot.slane %v2234_v14, %v1974_v4  ;;  %v627_v47 = vpop.permute.xlu0 %626 }
 0x134   :  { %v559_v3 = vpop.permute.xlu1 %558  ;;  %v479_v44 = vmul.f32 %v2168_v56, %v473_v37  ;;  %v480_v2 = vmul.f32 %v2168_v56, %v474_v61  ;;  %v538_v58 = vsel %vm537_vm15, %v2243_v27, %v536_v59  ;;  %v539_v17 = vsel %vm537_vm15, %v536_v59, %v2243_v27 }
 0x135   :  { %3059 = vst [vmem:[#allocation9_spill] sm:$0xff] %v2385_v52  ;;  %v523_v31 = vmul.f32 %v2329_v24, %v513_v57  ;;  %v524_v39 = vmul.f32 %v2345_v49, %v514_v41  ;;  %v2399_v21 = vrot.slane %v2236_v42, %v1974_v4  ;;  %vm2992_vm14 = vcmp.lt.s32.totalorder %v1928_v20, 96 }
 0x136   :  { %v456_v56 = vadd.f32 %v454_v46, %v431_v54  ;;  %v457_v26 = vadd.f32 %v455_v45, %v432_v43  ;;  %v504_v15 = vmul.f32 %v2202_v38, %v498_v40  ;;  %v505_v37 = vmul.f32 %v2202_v38, %v499_v34 }
 0x137   :  { %3060 = vst [vmem:[#allocation14_spill] sm:$0xff] %v2399_v21  ;;  %v548_v27 = vmul.f32 %v2364_v18, %v538_v58  ;;  %v549_v59 = vmul.f32 %v2368_v11, %v539_v17  ;;  %v2412_v46 = vrot.slane %v2234_v14, %v1997_v16  ;;  %v2416_v38 = vrot.slane %v2236_v42, %v1997_v16  ;;  %v652_v54 = vpop.permute.xlu0 %651  ;;  %v3096_v11 = vld [vmem:[#allocation18_spill] sm:$0xff] }
 0x138   :  { %v561_v51 = vpop.permute.xlu1 %560  ;;  %v481_v5 = vadd.f32 %v479_v44, %v456_v56  ;;  %v482_v6 = vadd.f32 %v480_v2, %v457_v26  ;;  %v529_v45 = vmul.f32 %v2222_v62, %v523_v31  ;;  %v530_v40 = vmul.f32 %v2222_v62, %v524_v39 }
 0x139   :  { %v563_v63 = vsel %vm2991_vm13, %v559_v3, %v561_v51  ;;  %v564_v4 = vsel %vm2991_vm13, %v561_v51, %v559_v3  ;;  %3061 = vst [vmem:[#allocation13_spill] sm:$0xff] %v2412_v46  ;;  %3062 = vst [vmem:[#allocation26_spill] sm:$0xff] %v2416_v38  ;;  %vm612_vm13 = vcmp.lt.s32.totalorder %v1928_v20, 95  ;;  %v554_v44 = vmul.f32 %v2268_v25, %v548_v27 }
 0x13a   :  { %v573_v51 = vmul.f32 %v2385_v52, %v563_v63  ;;  %v574_v57 = vmul.f32 %v2399_v21, %v564_v4  ;;  %v506_v16 = vadd.f32 %v504_v15, %v481_v5  ;;  %v507_v43 = vadd.f32 %v505_v37, %v482_v6  ;;  %v1392_v63 = vld [vmem:[#allocation2 + $0x30] ss:$0 sm:$0xff]  ;;  %v1393_v4 = vld [vmem:[#allocation2 + $0x38] ss:$0 sm:$0xff] }
 0x13b   :  { %v555_v62 = vmul.f32 %v2268_v25, %v549_v59  ;;  %v2437_v17 = vrot.slane %v2236_v42, %v2020_v9  ;;  %v3094_v52 = vld [vmem:[#allocation20_spill] sm:$0xff] }
 0x13c   :  { %v584_v35 = vpop.permute.xlu1 %583  ;;  %v531_v31 = vadd.f32 %v529_v45, %v506_v16  ;;  %v532_v39 = vadd.f32 %v530_v40, %v507_v43  ;;  %v579_v56 = vmul.f32 %v2299_v1, %v573_v51  ;;  %v580_v26 = vmul.f32 %v2299_v1, %v574_v57  ;;  %v634_v1 = vpop.permute.xlu0 %633 }
 0x13d   :  { %3064 = vst [vmem:[#allocation22_spill] sm:$0xff] %v2437_v17 }
 0x13e   :  { %v556_v25 = vadd.f32 %v554_v44, %v531_v31  ;;  %v557_v37 = vadd.f32 %v555_v62, %v532_v39 }
 0x140   :  { %v586_v61 = vpop.permute.xlu1 %585  ;;  %v581_v5 = vadd.f32 %v579_v56, %v556_v25  ;;  %v582_v6 = vadd.f32 %v580_v26, %v557_v37 }
 0x141   :  { %v588_v34 = vsel %vm2992_vm14, %v584_v35, %v586_v61  ;;  %v589_v3 = vsel %vm2992_vm14, %v586_v61, %v584_v35  ;;  %v2433_v35 = vrot.slane %v2234_v14, %v2020_v9  ;;  %vm637_vm14 = vcmp.lt.s32.totalorder %v1928_v20, 94 }
 0x142   :  { %v598_v2 = vmul.f32 %v2412_v46, %v588_v34  ;;  %v599_v58 = vmul.f32 %v2416_v38, %v589_v3 }
 0x143   :  { %3063 = vst [vmem:[#allocation27_spill] sm:$0xff] %v2433_v35 }
 0x144   :  { %v609_v41 = vpop.permute.xlu1 %608  ;;  %v604_v9 = vmul.f32 %v2348_v29, %v598_v2  ;;  %v605_v42 = vmul.f32 %v2348_v29, %v599_v58 }
 0x146   :  { %v606_v57 = vadd.f32 %v604_v9, %v581_v5  ;;  %v607_v29 = vadd.f32 %v605_v42, %v582_v6 }
 0x148   :  { %v611_v15 = vpop.permute.xlu1 %610 }
 0x149   :  { %v613_v61 = vsel %vm612_vm13, %v609_v41, %v611_v15  ;;  %v614_v14 = vsel %vm612_vm13, %v611_v15, %v609_v41 }
 0x14a   :  { %v623_v27 = vmul.f32 %v2433_v35, %v613_v61  ;;  %v624_v59 = vmul.f32 %v2437_v17, %v614_v14 }
 0x14c   :  { %v629_v45 = vmul.f32 %v627_v47, %v623_v27  ;;  %v630_v40 = vmul.f32 %v627_v47, %v624_v59  ;;  %v636_v34 = vpop.permute.xlu1 %635 }
 0x14d   :  { %v638_v3 = vsel %vm637_vm14, %v634_v1, %v636_v34  ;;  %v639_v51 = vsel %vm637_vm14, %v636_v34, %v634_v1  ;;  %v3067_v34 = vmov 3  }
 0x14e   :  { %v648_v41 = vmul.f32 %v1392_v63, %v638_v3  ;;  %v649_v16 = vmul.f32 %v1393_v4, %v639_v51  ;;  %v631_v62 = vadd.f32 %v629_v45, %v606_v57  ;;  %v632_v2 = vadd.f32 %v630_v40, %v607_v29  ;;  %v2457_v63 = vld [vmem:[%s2919_s3] sm:$0xff] }
 0x14f   :  { %3065 = vst [vmem:[#allocation10_spill] sm:$0xff] %v2457_v63  ;;  %v699_v45 = vld [vmem:[%s2918_s2] sm:$0xff]  ;;  %v3066_v40 = vmov 1   ;;  %v3068_v3 = vmov 4   ;;  %v3069_v51 = vmov 6   ;;  %v3070_v57 = vmov 0  }
 0x150   :  { %v654_v43 = vmul.f32 %v652_v54, %v648_v41  ;;  %v655_v44 = vmul.f32 %v652_v54, %v649_v16  ;;  %v3071_v16 = vmov 2  }
 0x152   :  { %v656_v58 = vadd.f32 %v654_v43, %v631_v62  ;;  %v657_v31 = vadd.f32 %v655_v44, %v632_v2  ;;  %v3072_v43 = vmov 5  }
 0x154   :  { %v658_v39 = vadd.f32 %v657_v31, %v656_v58  ;;  %v661_v56 = vmul.f32 %v656_v58, %v656_v58  ;;  %v662_v47 = vmul.f32 %v657_v31, %v657_v31 }
 0x156   :  { %659 = vadd.xlane.f32.xlu0 %v658_v39  ;;  %v663_v26 = vadd.f32 %v662_v47, %v661_v56 }
 0x158   :  { %664 = vadd.xlane.f32.xlu1 %v663_v26 }
 0x1e3   :  { %v660_v15 = vpop.xlane.xlu0 %659 }
 0x1e4   :  { %v666_v25 = vrot.slane %v660_v15, 4 }
 0x1e5   :  { %v665_v37 = vpop.xlane.xlu1 %664 }
 0x1e6   :  { %v667_v61 = vadd.f32 %v666_v25, %v660_v15  ;;  %v669_v14 = vrot.slane %v665_v37, 4 }
 0x1e8   :  { %v668_v9 = vmul.f32 0.001953125, %v667_v61  ;;  %v670_v42 = vadd.f32 %v669_v14, %v665_v37 }
 0x1ea   :  { %v672_v27 = vmul.f32 %v668_v9, %v668_v9  ;;  %v671_v59 = vmul.f32 0.001953125, %v670_v42 }
 0x1ec   :  { %v673_v54 = vsub.f32 %v671_v59, %v672_v27 }
 0x1ee   :  { %v674_v1 = vadd.f32 1e-05, %v673_v54 }
 0x1f0   :  { %1525 = vrsqrt.f32 %v674_v1 }
 0x1fa   :  { %v1526_v4 = vpop.eup %1525 }
 0x1fb   :  { %v676_v5 = vmul.f32 %v1526_v4, %v2457_v63 }
 0x1fd   :  { %685 = vperm.xlu1 %1479, %v676_v5   ;;  %v677_v6 = vmul.f32 %v676_v5, %v668_v9 }
 0x1ff   :  { %679 = vrot.lane.b32.xlu0 %v677_v6, %s1635_s8 }
 0x201   :  { %704 = vperm.xlu1 %1479, %v699_v45  }
 0x205   :  { %1480 = vset.pattern.permute.xlu1 %v3066_v40 }
 0x206   :  { %714 = vperm.xlu1 %1480, %v699_v45  }
 0x20a   :  { %1483 = vset.pattern.permute.xlu1 %v3067_v34 }
 0x20b   :  { %732 = vperm.xlu1 %1483, %v699_v45  }
 0x20f   :  { %1484 = vset.pattern.permute.xlu1 %v3068_v3 }
 0x210   :  { %742 = vperm.xlu1 %1484, %v699_v45  }
 0x214   :  { %1486 = vset.pattern.permute.xlu1 %v3069_v51 }
 0x215   :  { %762 = vperm.xlu1 %1486, %v699_v45  }
 0x219   :  { %1487 = vset.pattern.permute.xlu1 %v3070_v57 }
 0x271   :  { %v680_v29 = vpop.permute.xlu0 %679 }
 0x272   :  { %v682_v41 = vsub.f32 %v2457_v63, %v680_v29 }
 0x274   :  { %692 = vperm.xlu0 %1481, %v682_v41  }
 0x278   :  { %1482 = vset.pattern.permute.xlu0 %v3071_v16 }
 0x279   :  { %724 = vperm.xlu0 %1482, %v699_v45  }
 0x27c   :  { %v686_v44 = vpop.permute.xlu1 %685 }
 0x27d   :  { %1485 = vset.pattern.permute.xlu0 %v3072_v43  ;;  %v688_v39 = vmul.f32 %v686_v44, %v656_v58  ;;  %v689_v56 = vmul.f32 %v686_v44, %v657_v31 }
 0x27e   :  { %752 = vperm.xlu0 %1485, %v699_v45  }
 0x280   :  { %v705_v62 = vpop.permute.xlu1 %704 }
 0x282   :  { %1489 = vset.pattern.permute.xlu0 %v3067_v34 }
 0x285   :  { %v715_v2 = vpop.permute.xlu1 %714 }
 0x28a   :  { %v733_v61 = vpop.permute.xlu1 %732 }
 0x28f   :  { %v743_v29 = vpop.permute.xlu1 %742 }
 0x294   :  { %v763_v38 = vpop.permute.xlu1 %762 }
 0x2f3   :  { %v693_v47 = vpop.permute.xlu0 %692 }
 0x2f4   :  { %v695_v26 = vadd.f32 %v693_v47, %v688_v39  ;;  %v696_v15 = vadd.f32 %v693_v47, %v689_v56 }
 0x2f6   :  { %v697_v25 = vmax.f32 %v695_v26, 0.0  ;;  %v698_v37 = vmax.f32 %v696_v15, 0.0 }
 0x2f8   :  { %v700_v14 = vrot.slane %v697_v25, 3  ;;  %v701_v9 = vrot.slane %v698_v37, 3  ;;  %v711_v42 = vrot.slane %v697_v25, 2  ;;  %v712_v27 = vrot.slane %v698_v37, 2  ;;  %v725_v5 = vpop.permute.xlu0 %724 }
 0x2f9   :  { %v721_v6 = vrot.slane %v697_v25, 1  ;;  %v722_v45 = vrot.slane %v698_v37, 1  ;;  %v739_v58 = vrot.slane %v697_v25, 7  ;;  %v740_v31 = vrot.slane %v698_v37, 7 }
 0x2fa   :  { %v707_v59 = vmul.f32 %v705_v62, %v700_v14  ;;  %v708_v54 = vmul.f32 %v705_v62, %v701_v9  ;;  %v717_v1 = vmul.f32 %v715_v2, %v711_v42  ;;  %v718_v4 = vmul.f32 %v715_v2, %v712_v27 }
 0x2fb   :  { %v727_v39 = vmul.f32 %v725_v5, %v721_v6  ;;  %v728_v56 = vmul.f32 %v725_v5, %v722_v45  ;;  %v735_v47 = vmul.f32 %v733_v61, %v697_v25  ;;  %v736_v26 = vmul.f32 %v733_v61, %v698_v37 }
 0x2fc   :  { %v719_v41 = vadd.f32 %v717_v1, %v707_v59  ;;  %v720_v44 = vadd.f32 %v718_v4, %v708_v54  ;;  %v745_v57 = vmul.f32 %v743_v29, %v739_v58  ;;  %v746_v17 = vmul.f32 %v743_v29, %v740_v31 }
 0x2fd   :  { %v759_v14 = vrot.slane %v697_v25, 5  ;;  %v760_v62 = vrot.slane %v698_v37, 5  ;;  %v753_v9 = vpop.permute.xlu0 %752  ;;  %v749_v27 = vrot.slane %v697_v25, 6  ;;  %v750_v35 = vrot.slane %v698_v37, 6 }
 0x2fe   :  { %v729_v15 = vadd.f32 %v727_v39, %v719_v41  ;;  %v730_v34 = vadd.f32 %v728_v56, %v720_v44 }
 0x2ff   :  { %v755_v59 = vmul.f32 %v753_v9, %v749_v27  ;;  %v756_v54 = vmul.f32 %v753_v9, %v750_v35  ;;  %v765_v1 = vmul.f32 %v763_v38, %v759_v14  ;;  %v766_v4 = vmul.f32 %v763_v38, %v760_v62 }
 0x300   :  { %v737_v2 = vadd.f32 %v735_v47, %v729_v15  ;;  %v738_v42 = vadd.f32 %v736_v26, %v730_v34  ;;  %v2486_v47 = vld [vmem:[%s2917_s1 + $0x8] sm:$0xff]  ;;  %v3073_v26 = vmov 7   ;;  %v3074_v15 = vmov 8   ;;  %s1636_s1 = smov 5  }
 0x301   :  { %v3075_v14 = vmov 9   ;;  %v3076_v62 = vmov 10   ;;  %v3078_v27 = vmov 12  }
 0x302   :  { %v747_v46 = vadd.f32 %v745_v57, %v737_v2  ;;  %v748_v21 = vadd.f32 %v746_v17, %v738_v42  ;;  %v3077_v42 = vmov 11  }
 0x304   :  { %v757_v5 = vadd.f32 %v755_v59, %v747_v46  ;;  %v758_v61 = vadd.f32 %v756_v54, %v748_v21  ;;  %v3079_v59 = vmov 14   ;;  %v3080_v54 = vmov 13  }
 0x306   :  { %v2472_v6 = vadd.f32 %v765_v1, %v757_v5  ;;  %v2474_v45 = vadd.f32 %v766_v4, %v758_v61  ;;  %v3081_v1 = vmov 15   ;;  %v3082_v4 = vmov 16  }
 0x307   :  { %v3083_v5 = vmov 17   ;;  %v3084_v61 = vmov 18  }
 0x308   :  { %v769_v29 = vadd.f32 %v2474_v45, %v2472_v6  ;;  %v772_v34 = vmul.f32 %v2472_v6, %v2472_v6  ;;  %v773_v57 = vmul.f32 %v2474_v45, %v2474_v45 }
 0x30a   :  { %770 = vadd.xlane.f32.xlu1 %v769_v29  ;;  %v774_v17 = vadd.f32 %v773_v57, %v772_v34  ;;  %v3085_v29 = vmov 19   ;;  %v3086_v34 = vmov 20  }
 0x30c   :  { %775 = vadd.xlane.f32.xlu0 %v774_v17 }
 0x397   :  { %v771_v35 = vpop.xlane.xlu1 %770 }
 0x398   :  { %v777_v38 = vrot.slane %v771_v35, 4 }
 0x399   :  { %v776_v46 = vpop.xlane.xlu0 %775 }
 0x39a   :  { %v778_v21 = vadd.f32 %v777_v38, %v771_v35  ;;  %v780_v25 = vrot.slane %v776_v46, 4 }
 0x39c   :  { %v779_v37 = vmul.f32 0.001953125, %v778_v21  ;;  %v781_v58 = vadd.f32 %v780_v25, %v776_v46 }
 0x39e   :  { %v783_v31 = vmul.f32 %v779_v37, %v779_v37  ;;  %v782_v41 = vmul.f32 0.001953125, %v781_v58 }
 0x3a0   :  { %v784_v44 = vsub.f32 %v782_v41, %v783_v31 }
 0x3a2   :  { %v785_v39 = vadd.f32 1e-05, %v784_v44 }
 0x3a4   :  { %1527 = vrsqrt.f32 %v785_v39 }
 0x3ae   :  { %v1528_v56 = vpop.eup %1527 }
 0x3af   :  { %788 = vrot.lane.b32.xlu0 %v1528_v56, %s1617_s23 }
 0x3b3   :  { %875 = vperm.xlu0 %1489, %v2486_v47  }
 0x3b7   :  { %1490 = vset.pattern.permute.xlu0 %v3068_v3 }
 0x3b8   :  { %891 = vperm.xlu0 %1490, %v2486_v47  }
 0x3bc   :  { %1491 = vset.pattern.permute.xlu0 %v3072_v43 }
 0x3bd   :  { %907 = vperm.xlu0 %1491, %v2486_v47  }
 0x3c1   :  { %1492 = vset.pattern.permute.xlu0 %v3069_v51 }
 0x3c2   :  { %923 = vperm.xlu0 %1492, %v2486_v47  }
 0x3c6   :  { %1493 = vset.pattern.permute.xlu0 %v3073_v26 }
 0x3c7   :  { %939 = vperm.xlu0 %1493, %v2486_v47  }
 0x3cb   :  { %1494 = vset.pattern.permute.xlu0 %v3074_v15 }
 0x3cc   :  { %955 = vperm.xlu0 %1494, %v2486_v47  }
 0x3d0   :  { %1495 = vset.pattern.permute.xlu0 %v3075_v14 }
 0x3d1   :  { %971 = vperm.xlu0 %1495, %v2486_v47  }
 0x3d5   :  { %1496 = vset.pattern.permute.xlu0 %v3076_v62 }
 0x3d6   :  { %987 = vperm.xlu0 %1496, %v2486_v47  }
 0x3da   :  { %1497 = vset.pattern.permute.xlu0 %v3066_v40  ;;  %v3093_v40 = vld [vmem:[#allocation19_spill] sm:$0xff] }
 0x3db   :  { %843 = vperm.xlu0 %1497, %v2486_v47  }
 0x421   :  { %v789_v9 = vpop.permute.xlu0 %788 }
 0x422   :  { %v791_v2 = vmul.f32 %v789_v9, %v2457_v63 }
 0x424   :  { %803 = vperm.xlu0 %1497, %v791_v2   ;;  %793 = vrot.lane.b32.xlu1 %v791_v2, %s1610_s19 }
 0x428   :  { %827 = vperm.xlu1 %1487, %v2486_v47   ;;  %1498 = vset.pattern.permute.xlu0 %v3077_v42 }
 0x429   :  { %1003 = vperm.xlu0 %1498, %v2486_v47  }
 0x42c   :  { %1488 = vset.pattern.permute.xlu1 %v3071_v16 }
 0x42d   :  { %859 = vperm.xlu1 %1488, %v2486_v47   ;;  %1499 = vset.pattern.permute.xlu0 %v3078_v27 }
 0x42e   :  { %1011 = vperm.xlu0 %1499, %v2486_v47  }
 0x431   :  { %1501 = vset.pattern.permute.xlu1 %v3079_v59 }
 0x432   :  { %1043 = vperm.xlu1 %1501, %v2486_v47   ;;  %1500 = vset.pattern.permute.xlu0 %v3080_v54  ;;  %v2540_v31 = vpop.permute.xlu0 %875 }
 0x433   :  { %1027 = vperm.xlu0 %1500, %v2486_v47  }
 0x436   :  { %1502 = vset.pattern.permute.xlu1 %v3081_v1  ;;  %v3089_v1 = vmov 23  }
 0x437   :  { %1059 = vperm.xlu1 %1502, %v2486_v47   ;;  %1503 = vset.pattern.permute.xlu0 %v3082_v4  ;;  %v2542_v41 = vpop.permute.xlu0 %891  ;;  %v3090_v4 = vmov 24  }
 0x438   :  { %1075 = vperm.xlu0 %1503, %v2486_v47  }
 0x43b   :  { %1507 = vset.pattern.permute.xlu1 %v3072_v43 }
 0x43c   :  { %1504 = vset.pattern.permute.xlu0 %v3083_v5 }
 0x43d   :  { %1091 = vperm.xlu0 %1504, %v2486_v47  }
 0x441   :  { %1505 = vset.pattern.permute.xlu0 %v3084_v61 }
 0x442   :  { %1107 = vperm.xlu0 %1505, %v2486_v47  }
 0x446   :  { %1506 = vset.pattern.permute.xlu0 %v3085_v29 }
 0x447   :  { %1123 = vperm.xlu0 %1506, %v2486_v47  }
 0x44b   :  { %1508 = vset.pattern.permute.xlu0 %v3086_v34 }
 0x496   :  { %v794_v57 = vpop.permute.xlu1 %793 }
 0x497   :  { %v796_v17 = vmul.f32 %v794_v57, %v779_v37  ;;  %v2544_v37 = vpop.permute.xlu0 %907 }
 0x499   :  { %798 = vrot.lane.b32.xlu1 %v796_v17, %s1636_s1 }
 0x49b   :  { %v2546_v44 = vpop.permute.xlu0 %923 }
 0x49f   :  { %v2548_v39 = vpop.permute.xlu0 %939 }
 0x4a3   :  { %v2550_v56 = vpop.permute.xlu0 %955 }
 0x4a7   :  { %v2530_v35 = vpop.permute.xlu1 %827  ;;  %v2552_v15 = vpop.permute.xlu0 %971 }
 0x4ab   :  { %v2554_v14 = vpop.permute.xlu0 %987 }
 0x4ac   :  { %v2532_v38 = vpop.permute.xlu1 %859 }
 0x4af   :  { %v2556_v62 = vpop.permute.xlu0 %843 }
 0x4b1   :  { %v2534_v46 = vpop.permute.xlu1 %1043 }
 0x4b3   :  { %v804_v9 = vpop.permute.xlu0 %803 }
 0x4b4   :  { %v806_v2 = vmul.f32 %v804_v9, %v2472_v6  ;;  %v807_v42 = vmul.f32 %v804_v9, %v2474_v45  ;;  %v3087_v6 = vmov 21   ;;  %v3088_v45 = vmov 22  }
 0x4b6   :  { %v2536_v21 = vpop.permute.xlu1 %1059 }
 0x50b   :  { %v799_v25 = vpop.permute.xlu1 %798 }
 0x50c   :  { %v801_v58 = vsub.f32 %v2457_v63, %v799_v25 }
 0x50e   :  { %810 = vperm.xlu1 %1507, %v801_v58  }
 0x512   :  { %1513 = vset.pattern.permute.xlu1 %v3071_v16 }
 0x58d   :  { %v811_v27 = vpop.permute.xlu1 %810 }
 0x58e   :  { %v2560_v59 = vadd.f32 %v811_v27, %v806_v2  ;;  %v2562_v54 = vadd.f32 %v811_v27, %v807_v42 }
 0x590   :  { %819 = vrot.lane.b32.xlu1 %v2562_v54, %s1589_s4  ;;  %817 = vrot.lane.b32.xlu0 %v2560_v59, %s1589_s4  ;;  %s3102_s4 = smov 95  }
 0x594   :  { %836 = vrot.lane.b32.xlu1 %v2562_v54, %s1592_s13  ;;  %834 = vrot.lane.b32.xlu0 %v2560_v59, %s1592_s13 }
 0x598   :  { %850 = vrot.lane.b32.xlu1 %v2560_v59, %s1594_s0  ;;  %1139 = vperm.xlu0 %1508, %v2486_v47  }
 0x59c   :  { %852 = vrot.lane.b32.xlu1 %v2562_v54, %s1594_s0  ;;  %1509 = vset.pattern.permute.xlu0 %v3087_v6 }
 0x59d   :  { %1155 = vperm.xlu0 %1509, %v2486_v47  }
 0x5a0   :  { %866 = vrot.lane.b32.xlu1 %v2560_v59, %s1597_s14 }
 0x5a1   :  { %1510 = vset.pattern.permute.xlu0 %v3088_v45 }
 0x5a2   :  { %1171 = vperm.xlu0 %1510, %v2486_v47  }
 0x5a4   :  { %868 = vrot.lane.b32.xlu1 %v2562_v54, %s1597_s14 }
 0x5a6   :  { %1020 = vrot.lane.b32.xlu0 %v2562_v54, %s1610_s19 }
 0x5a7   :  { %1511 = vset.pattern.permute.xlu0 %v3089_v1 }
 0x5a8   :  { %882 = vrot.lane.b32.xlu1 %v2560_v59, %s1599_s15 }
 0x5aa   :  { %1034 = vrot.lane.b32.xlu0 %v2560_v59, %s1612_s20 }
 0x5ac   :  { %884 = vrot.lane.b32.xlu1 %v2562_v54, %s1599_s15 }
 0x5ae   :  { %1187 = vperm.xlu0 %1511, %v2486_v47  }
 0x5b0   :  { %898 = vrot.lane.b32.xlu1 %v2560_v59, %s1602_s16 }
 0x5b2   :  { %1512 = vset.pattern.permute.xlu0 %v3090_v4 }
 0x5b3   :  { %1203 = vperm.xlu0 %1512, %v2486_v47   ;;  %v2628_v47 = vpop.permute.xlu0 %1003 }
 0x5b4   :  { %900 = vrot.lane.b32.xlu1 %v2562_v54, %s1602_s16  ;;  %s1639_s16 = smov 125  }
 0x5b7   :  { %1194 = vrot.lane.b32.xlu0 %v2560_v59, %s1626_s25  ;;  %v2634_v5 = vpop.permute.xlu0 %1011 }
 0x5b8   :  { %914 = vrot.lane.b32.xlu1 %v2560_v59, %s1605_s17  ;;  %1516 = vset.pattern.permute.xlu0 %v3069_v51 }
 0x5bb   :  { %v2638_v61 = vpop.permute.xlu0 %1027 }
 0x5bc   :  { %916 = vrot.lane.b32.xlu1 %v2562_v54, %s1605_s17  ;;  %s1640_s17 = smov 7  }
 0x5bf   :  { %v2642_v29 = vpop.permute.xlu0 %1075 }
 0x5c0   :  { %930 = vrot.lane.b32.xlu1 %v2560_v59, %s1586_s29 }
 0x5c3   :  { %v2648_v34 = vpop.permute.xlu0 %1091 }
 0x5c4   :  { %932 = vrot.lane.b32.xlu1 %v2562_v54, %s1586_s29  ;;  %s3101_s29 = smov 96  }
 0x5c7   :  { %v2652_v17 = vpop.permute.xlu0 %1107 }
 0x5c8   :  { %946 = vrot.lane.b32.xlu1 %v2560_v59, %s1609_s18  ;;  %3091 = vst [vmem:[#allocation11_spill] sm:$0xff] %v2652_v17 }
 0x5cb   :  { %v2658_v58 = vpop.permute.xlu0 %1123 }
 0x5cc   :  { %948 = vrot.lane.b32.xlu1 %v2562_v54, %s1609_s18  ;;  %3092 = vst [vmem:[#allocation15_spill] sm:$0xff] %v2658_v58  ;;  %s1641_s18 = smov [#allocation5]  }
 0x5d0   :  { %962 = vrot.lane.b32.xlu1 %v2560_v59, %s1613_s21 }
 0x5d4   :  { %964 = vrot.lane.b32.xlu1 %v2562_v54, %s1613_s21 }
 0x5d8   :  { %978 = vrot.lane.b32.xlu1 %v2560_v59, %s1615_s22 }
 0x5dc   :  { %980 = vrot.lane.b32.xlu1 %v2562_v54, %s1615_s22 }
 0x5e0   :  { %994 = vrot.lane.b32.xlu1 %v2560_v59, %s1617_s23 }
 0x5e4   :  { %996 = vrot.lane.b32.xlu1 %v2562_v54, %s1617_s23 }
 0x5e8   :  { %1018 = vrot.lane.b32.xlu1 %v2560_v59, %s1610_s19  ;;  %s1383_s19 = sshll.u32 %s1641_s18, 4  ;;  %s1384_s19 = int_to_ptr.vmem [resolvable:$true] %s1383_s19 }
 0x5e9   :  { %p1563_p9 = scmp.lt.s32.totalorder %s1384_s19, %s1384_s19 }
 0x5ec   :  { %1036 = vrot.lane.b32.xlu1 %v2562_v54, %s1612_s20 }
 0x5f0   :  { %1050 = vrot.lane.b32.xlu1 %v2560_v59, %s1624_s24 }
 0x5f4   :  { %1052 = vrot.lane.b32.xlu1 %v2562_v54, %s1624_s24 }
 0x5f8   :  { %1066 = vrot.lane.b32.xlu1 %v2560_v59, %s1627_s26 }
 0x5fc   :  { %1068 = vrot.lane.b32.xlu1 %v2562_v54, %s1627_s26 }
 0x600   :  { %1082 = vrot.lane.b32.xlu1 %v2560_v59, %s1628_s27 }
 0x602   :  { %v820_v57 = vpop.permute.xlu1 %819  ;;  %v818_v42 = vpop.permute.xlu0 %817 }
 0x603   :  { %v821_v43 = vsel %vm53_vm1, %v818_v42, %v820_v57  ;;  %v822_v16 = vsel %vm53_vm1, %v820_v57, %v818_v42 }
 0x604   :  { %1084 = vrot.lane.b32.xlu1 %v2562_v54, %s1628_s27  ;;  %v824_v18 = vmul.f32 %v821_v43, %v3096_v11  ;;  %v3098_v43 = vld [vmem:[#allocation23_spill] sm:$0xff] }
 0x606   :  { %v837_v25 = vpop.permute.xlu1 %836  ;;  %v835_v6 = vpop.permute.xlu0 %834 }
 0x607   :  { %v838_v1 = vsel %vm79_vm0, %v835_v6, %v837_v25  ;;  %v839_v4 = vsel %vm79_vm0, %v837_v25, %v835_v6  ;;  %v3095_v25 = vld [vmem:[#allocation17_spill] sm:$0xff]  ;;  %vm3108_vm0 = vcmp.lt.s32.totalorder %v1928_v20, 127 }
 0x608   :  { %1098 = vrot.lane.b32.xlu1 %v2560_v59, %s1629_s28  ;;  %v840_v63 = vmul.f32 %v839_v4, %v3093_v40  ;;  %v841_v58 = vmul.f32 %v838_v1, %v3094_v52  ;;  %v823_v6 = vmul.f32 %v822_v16, %v3095_v25  ;;  %v3099_v25 = vld [vmem:[#allocation24_spill] sm:$0xff]  ;;  %vm3109_vm1 = vmmov %vm3108_vm0 }
 0x60a   :  { %v851_v9 = vpop.permute.xlu1 %850  ;;  %v846_v16 = vmul.f32 %v2556_v62, %v840_v63  ;;  %v847_v11 = vmul.f32 %v2556_v62, %v841_v58  ;;  %v3100_v63 = vld [vmem:[#allocation25_spill] sm:$0xff] }
 0x60c   :  { %1100 = vrot.lane.b32.xlu1 %v2562_v54, %s1629_s28 }
 0x60e   :  { %v853_v2 = vpop.permute.xlu1 %852 }
 0x60f   :  { %v854_v51 = vsel %vm104_vm2, %v851_v9, %v853_v2  ;;  %v855_v3 = vsel %vm104_vm2, %v853_v2, %v851_v9  ;;  %v3097_v9 = vld [vmem:[#allocation21_spill] sm:$0xff]  ;;  %vm3110_vm2 = vcmp.lt.s32.totalorder %v1928_v20, 126 }
 0x610   :  { %1114 = vrot.lane.b32.xlu1 %v2560_v59, %s1630_s30  ;;  %v856_v17 = vmul.f32 %v855_v3, %v1960_v0  ;;  %v857_v2 = vmul.f32 %v854_v51, %v3097_v9  ;;  %v830_v0 = vmul.f32 %v2530_v35, %v823_v6  ;;  %v831_v3 = vmul.f32 %v2530_v35, %v824_v18 }
 0x612   :  { %v867_v27 = vpop.permute.xlu1 %866  ;;  %v862_v51 = vmul.f32 %v2532_v38, %v856_v17  ;;  %v848_v58 = vadd.f32 %v846_v16, %v830_v0 }
 0x614   :  { %1116 = vrot.lane.b32.xlu1 %v2562_v54, %s1630_s30  ;;  %v864_v6 = vadd.f32 %v862_v51, %v848_v58 }
 0x616   :  { %v869_v45 = vpop.permute.xlu1 %868 }
 0x617   :  { %v870_v57 = vsel %vm129_vm3, %v867_v27, %v869_v45  ;;  %v871_v42 = vsel %vm129_vm3, %v869_v45, %v867_v27  ;;  %v863_v27 = vmul.f32 %v2532_v38, %v857_v2  ;;  %vm3111_vm3 = vmmov %vm3110_vm2 }
 0x618   :  { %1130 = vrot.lane.b32.xlu1 %v2560_v59, %s1631_s6  ;;  %v872_v4 = vmul.f32 %v871_v42, %v3098_v43  ;;  %v873_v49 = vmul.f32 %v870_v57, %v3099_v25  ;;  %v849_v42 = vadd.f32 %v847_v11, %v831_v3 }
 0x61a   :  { %v883_v26 = vpop.permute.xlu1 %882  ;;  %v878_v57 = vmul.f32 %v2540_v31, %v872_v4  ;;  %v879_v9 = vmul.f32 %v2540_v31, %v873_v49  ;;  %v865_v18 = vadd.f32 %v863_v27, %v849_v42 }
 0x61c   :  { %1132 = vrot.lane.b32.xlu1 %v2562_v54, %s1631_s6 }
 0x61e   :  { %v885_v40 = vpop.permute.xlu1 %884 }
 0x61f   :  { %v886_v52 = vsel %vm154_vm4, %v883_v26, %v885_v40  ;;  %v887_v1 = vsel %vm154_vm4, %v885_v40, %v883_v26  ;;  %v880_v40 = vadd.f32 %v878_v57, %v864_v6  ;;  %vm3116_vm4 = vcmp.lt.s32.totalorder %v1928_v20, 114 }
 0x620   :  { %1146 = vrot.lane.b32.xlu1 %v2560_v59, %s1632_s7  ;;  %v888_v26 = vmul.f32 %v887_v1, %v1984_v10  ;;  %v889_v45 = vmul.f32 %v886_v52, %v3100_v63  ;;  %v881_v52 = vadd.f32 %v879_v9, %v865_v18 }
 0x622   :  { %v899_v62 = vpop.permute.xlu1 %898  ;;  %v894_v35 = vmul.f32 %v2542_v41, %v888_v26  ;;  %v895_v38 = vmul.f32 %v2542_v41, %v889_v45 }
 0x624   :  { %1148 = vrot.lane.b32.xlu1 %v2562_v54, %s1632_s7  ;;  %v896_v1 = vadd.f32 %v894_v35, %v880_v40  ;;  %v897_v16 = vadd.f32 %v895_v38, %v881_v52 }
 0x626   :  { %v901_v17 = vpop.permute.xlu1 %900 }
 0x627   :  { %v902_v10 = vsel %vm179_vm5, %v899_v62, %v901_v17  ;;  %v903_v2 = vsel %vm179_vm5, %v901_v17, %v899_v62  ;;  %vm3117_vm5 = vmmov %vm3116_vm4 }
 0x628   :  { %v904_v49 = vmul.f32 %v903_v2, %v2015_v7  ;;  %v905_v31 = vmul.f32 %v902_v10, %v2018_v8  ;;  %1162 = vrot.lane.b32.xlu1 %v2560_v59, %s3101_s29 }
 0x62a   :  { %v910_v41 = vmul.f32 %v2544_v37, %v904_v49  ;;  %v911_v11 = vmul.f32 %v2544_v37, %v905_v31  ;;  %v915_v43 = vpop.permute.xlu1 %914 }
 0x62c   :  { %v912_v4 = vadd.f32 %v910_v41, %v896_v1  ;;  %v913_v25 = vadd.f32 %v911_v11, %v897_v16  ;;  %1164 = vrot.lane.b32.xlu1 %v2562_v54, %s3101_s29  ;;  %v3103_v41 = vld [vmem:[#allocation28_spill] sm:$0xff] }
 0x62e   :  { %v917_v0 = vpop.permute.xlu1 %916 }
 0x62f   :  { %v918_v7 = vsel %vm204_vm6, %v915_v43, %v917_v0  ;;  %v919_v8 = vsel %vm204_vm6, %v917_v0, %v915_v43  ;;  %vm3118_vm6 = vcmp.lt.s32.totalorder %v1928_v20, 113 }
 0x630   :  { %v920_v3 = vmul.f32 %v919_v8, %v2036_v23  ;;  %v921_v51 = vmul.f32 %v918_v7, %v2041_v12  ;;  %1178 = vrot.lane.b32.xlu1 %v2560_v59, %s3102_s4  ;;  %v3104_v8 = vld [vmem:[#allocation29_spill] sm:$0xff] }
 0x632   :  { %v926_v37 = vmul.f32 %v2546_v44, %v920_v3  ;;  %v927_v27 = vmul.f32 %v2546_v44, %v921_v51  ;;  %v931_v26 = vpop.permute.xlu1 %930  ;;  %v3105_v51 = vld [vmem:[#allocation30_spill] sm:$0xff] }
 0x634   :  { %v928_v63 = vadd.f32 %v926_v37, %v912_v4  ;;  %v929_v45 = vadd.f32 %v927_v27, %v913_v25  ;;  %1180 = vrot.lane.b32.xlu1 %v2562_v54, %s3102_s4 }
 0x636   :  { %v933_v62 = vpop.permute.xlu1 %932 }
 0x637   :  { %v934_v58 = vsel %vm229_vm7, %v931_v26, %v933_v62  ;;  %v935_v12 = vsel %vm229_vm7, %v933_v62, %v931_v26  ;;  %vm3119_vm7 = vmmov %vm3118_vm6 }
 0x638   :  { %v936_v23 = vmul.f32 %v935_v12, %v2061_v33  ;;  %v937_v42 = vmul.f32 %v934_v58, %v2064_v32  ;;  %1196 = vrot.lane.b32.xlu1 %v2562_v54, %s1626_s25 }
 0x63a   :  { %v942_v44 = vmul.f32 %v2548_v39, %v936_v23  ;;  %v943_v57 = vmul.f32 %v2548_v39, %v937_v42  ;;  %v947_v9 = vpop.permute.xlu1 %946 }
 0x63c   :  { %v944_v6 = vadd.f32 %v942_v44, %v928_v63  ;;  %v945_v18 = vadd.f32 %v943_v57, %v929_v45 }
 0x63e   :  { %v949_v35 = vpop.permute.xlu1 %948 }
 0x63f   :  { %v950_v38 = vsel %vm254_vm8, %v947_v9, %v949_v35  ;;  %v951_v17 = vsel %vm254_vm8, %v949_v35, %v947_v9  ;;  %v2772_v9 = vpop.permute.xlu0 %1139  ;;  %vm3120_vm8 = vcmp.lt.s32.totalorder %v1928_v20, 111 }
 0x640   :  { %v952_v33 = vmul.f32 %v951_v17, %v2085_v28  ;;  %v953_v32 = vmul.f32 %v950_v38, %v2105_v50 }
 0x642   :  { %v958_v10 = vmul.f32 %v2550_v56, %v952_v33  ;;  %v959_v2 = vmul.f32 %v2550_v56, %v953_v32  ;;  %v963_v40 = vpop.permute.xlu1 %962 }
 0x644   :  { %v960_v39 = vadd.f32 %v958_v10, %v944_v6  ;;  %v961_v52 = vadd.f32 %v959_v2, %v945_v18  ;;  %v2774_v18 = vpop.permute.xlu0 %1155  ;;  %v3106_v10 = vld [vmem:[#allocation31_spill] sm:$0xff] }
 0x646   :  { %v965_v49 = vpop.permute.xlu1 %964 }
 0x647   :  { %v966_v31 = vsel %vm279_vm9, %v963_v40, %v965_v49  ;;  %v967_v1 = vsel %vm279_vm9, %v965_v49, %v963_v40  ;;  %v3107_v40 = vld [vmem:[#allocation32_spill] sm:$0xff]  ;;  %vm3121_vm9 = vmmov %vm3120_vm8 }
 0x648   :  { %v968_v16 = vmul.f32 %v967_v1, %v2124_v36  ;;  %v969_v28 = vmul.f32 %v966_v31, %v3103_v41  ;;  %v2776_v17 = vpop.permute.xlu0 %1171 }
 0x64a   :  { %v974_v50 = vmul.f32 %v2552_v15, %v968_v16  ;;  %v975_v11 = vmul.f32 %v2552_v15, %v969_v28  ;;  %v979_v43 = vpop.permute.xlu1 %978 }
 0x64c   :  { %v976_v56 = vadd.f32 %v974_v50, %v960_v39  ;;  %v977_v4 = vadd.f32 %v975_v11, %v961_v52  ;;  %v1021_v52 = vpop.permute.xlu0 %1020 }
 0x64e   :  { %v981_v25 = vpop.permute.xlu1 %980 }
 0x64f   :  { %v982_v0 = vsel %vm304_vm10, %v979_v43, %v981_v25  ;;  %v983_v7 = vsel %vm304_vm10, %v981_v25, %v979_v43  ;;  %v3112_v25 = vld [vmem:[#allocation33_spill] sm:$0xff]  ;;  %vm3122_vm10 = vcmp.lt.s32.totalorder %v1928_v20, 110 }
 0x650   :  { %v984_v3 = vmul.f32 %v983_v7, %v3104_v8  ;;  %v985_v36 = vmul.f32 %v982_v0, %v3105_v51  ;;  %v1035_v50 = vpop.permute.xlu0 %1034  ;;  %v3113_v7 = vld [vmem:[#allocation34_spill] sm:$0xff]  ;;  %v1015_v51 = vmul.f32 %v2634_v5, %v2562_v54 }
 0x652   :  { %v990_v37 = vmul.f32 %v2554_v14, %v984_v3  ;;  %v991_v27 = vmul.f32 %v2554_v14, %v985_v36  ;;  %v995_v26 = vpop.permute.xlu1 %994  ;;  %v1014_v3 = vmul.f32 %v2634_v5, %v2560_v59  ;;  %v3114_v36 = vld [vmem:[#allocation35_spill] sm:$0xff] }
 0x654   :  { %v992_v15 = vadd.f32 %v990_v37, %v976_v56  ;;  %v993_v63 = vadd.f32 %v991_v27, %v977_v4  ;;  %v3115_v27 = vld [vmem:[#allocation36_spill] sm:$0xff] }
 0x656   :  { %v997_v45 = vpop.permute.xlu1 %996 }
 0x657   :  { %v998_v14 = vsel %vm329_vm11, %v995_v26, %v997_v45  ;;  %v999_v33 = vsel %vm329_vm11, %v997_v45, %v995_v26  ;;  %vm3123_vm11 = vmmov %vm3122_vm10 }
 0x658   :  { %v1000_v2 = vmul.f32 %v999_v33, %v3106_v10  ;;  %v1001_v39 = vmul.f32 %v998_v14, %v3107_v40 }
 0x65a   :  { %v1019_v62 = vpop.permute.xlu1 %1018  ;;  %v1006_v31 = vmul.f32 %v2628_v47, %v1000_v2  ;;  %v1007_v1 = vmul.f32 %v2628_v47, %v1001_v39 }
 0x65b   :  { %v1022_v41 = vsel %vm3108_vm0, %v1019_v62, %v1021_v52  ;;  %v1023_v28 = vsel %vm3109_vm1, %v1021_v52, %v1019_v62  ;;  %vm3131_vm0 = vcmp.lt.s32.totalorder %v1928_v20, 96 }
 0x65c   :  { %v1008_v11 = vadd.f32 %v1006_v31, %v992_v15  ;;  %v1009_v43 = vadd.f32 %v1007_v1, %v993_v63  ;;  %v1024_v0 = vmul.f32 %v1022_v41, %v3112_v25  ;;  %v1025_v47 = vmul.f32 %v1023_v28, %v3113_v7  ;;  %v1188_v25 = vpop.permute.xlu0 %1187  ;;  %vm3132_vm1 = vmmov %vm3131_vm0 }
 0x65e   :  { %v1037_v58 = vpop.permute.xlu1 %1036  ;;  %v1016_v45 = vadd.f32 %v1014_v3, %v1008_v11  ;;  %v1017_v62 = vadd.f32 %v1015_v51, %v1009_v43  ;;  %v1031_v14 = vmul.f32 %v2638_v61, %v1025_v47  ;;  %v3126_v51 = vld [vmem:[#allocation8_spill] sm:$0xff] }
 0x65f   :  { %v1038_v56 = vsel %vm3110_vm2, %v1035_v50, %v1037_v58  ;;  %v1039_v4 = vsel %vm3111_vm3, %v1037_v58, %v1035_v50  ;;  %v1030_v58 = vmul.f32 %v2638_v61, %v1024_v0 }
 0x660   :  { %v1040_v37 = vmul.f32 %v1038_v56, %v3114_v36  ;;  %v1041_v26 = vmul.f32 %v1039_v4, %v3115_v27  ;;  %v3124_v56 = vld [vmem:[#allocation12_spill] sm:$0xff] }
 0x661   :  { %v3127_v36 = vld [vmem:[#allocation16_spill] sm:$0xff] }
 0x662   :  { %v1051_v12 = vpop.permute.xlu1 %1050  ;;  %v1046_v2 = vmul.f32 %v2534_v46, %v1040_v37 }
 0x666   :  { %v1053_v23 = vpop.permute.xlu1 %1052 }
 0x667   :  { %v1054_v15 = vsel %vm3116_vm4, %v1051_v12, %v1053_v23  ;;  %v1055_v63 = vsel %vm3117_vm5, %v1053_v23, %v1051_v12  ;;  %v1047_v12 = vmul.f32 %v2534_v46, %v1041_v26  ;;  %v3130_v26 = vld [vmem:[#allocation15_spill] sm:$0xff] }
 0x668   :  { %v1056_v33 = vmul.f32 %v1054_v15, %v2241_v30  ;;  %v1057_v10 = vmul.f32 %v1055_v63, %v2257_v13 }
 0x66a   :  { %v1067_v42 = vpop.permute.xlu1 %1066  ;;  %v1062_v30 = vmul.f32 %v2536_v21, %v1056_v33  ;;  %v1063_v13 = vmul.f32 %v2536_v21, %v1057_v10 }
 0x66e   :  { %v1069_v44 = vpop.permute.xlu1 %1068 }
 0x66f   :  { %v1070_v59 = vsel %vm3118_vm6, %v1067_v42, %v1069_v44  ;;  %v1071_v54 = vsel %vm3119_vm7, %v1069_v44, %v1067_v42  ;;  %v1032_v42 = vadd.f32 %v1030_v58, %v1016_v45  ;;  %v1033_v44 = vadd.f32 %v1031_v14, %v1017_v62  ;;  %v3133_v58 = vld [vmem:[#allocation9_spill] sm:$0xff] }
 0x670   :  { %v1072_v23 = vmul.f32 %v1070_v59, %v2262_v48  ;;  %v1073_v40 = vmul.f32 %v1071_v54, %v2266_v22  ;;  %v3134_v59 = vld [vmem:[#allocation14_spill] sm:$0xff] }
 0x671   :  { %v1048_v1 = vadd.f32 %v1046_v2, %v1032_v42  ;;  %v1049_v41 = vadd.f32 %v1047_v12, %v1033_v44 }
 0x672   :  { %v1083_v57 = vpop.permute.xlu1 %1082 }
 0x673   :  { %v1065_v11 = vadd.f32 %v1063_v13, %v1049_v41 }
 0x676   :  { %v1085_v6 = vpop.permute.xlu1 %1084 }
 0x677   :  { %v1086_v61 = vsel %vm462_vm12, %v1083_v57, %v1085_v6  ;;  %v1087_v39 = vsel %vm462_vm12, %v1085_v6, %v1083_v57  ;;  %v1078_v57 = vmul.f32 %v2642_v29, %v1072_v23  ;;  %v1079_v6 = vmul.f32 %v2642_v29, %v1073_v40  ;;  %v1204_v23 = vpop.permute.xlu0 %1203  ;;  %v3135_v40 = vld [vmem:[#allocation13_spill] sm:$0xff] }
 0x678   :  { %v1088_v22 = vmul.f32 %v1086_v61, %v2283_v19  ;;  %v1089_v31 = vmul.f32 %v1087_v39, %v2303_v53  ;;  %v1064_v19 = vadd.f32 %v1062_v30, %v1048_v1  ;;  %vm3128_vm12 = vcmp.lt.s32.totalorder %v1928_v20, 97  ;;  %v3136_v39 = vld [vmem:[#allocation26_spill] sm:$0xff] }
 0x67a   :  { %v1099_v35 = vpop.permute.xlu1 %1098  ;;  %v1094_v53 = vmul.f32 %v2648_v34, %v1088_v22  ;;  %v1095_v43 = vmul.f32 %v2648_v34, %v1089_v31  ;;  %v1080_v0 = vadd.f32 %v1078_v57, %v1064_v19  ;;  %v3137_v57 = vld [vmem:[#allocation27_spill] sm:$0xff] }
 0x67e   :  { %v1101_v38 = vpop.permute.xlu1 %1100 }
 0x67f   :  { %v1102_v46 = vsel %vm3120_vm8, %v1099_v35, %v1101_v38  ;;  %v1103_v48 = vsel %vm3121_vm9, %v1101_v38, %v1099_v35 }
 0x680   :  { %v1104_v28 = vmul.f32 %v1102_v46, %v2308_v55  ;;  %v1105_v21 = vmul.f32 %v1103_v48, %v2312_v60 }
 0x682   :  { %v1115_v32 = vpop.permute.xlu1 %1114 }
 0x686   :  { %v1117_v49 = vpop.permute.xlu1 %1116 }
 0x687   :  { %v1118_v50 = vsel %vm3122_vm10, %v1115_v32, %v1117_v49  ;;  %v1119_v35 = vsel %vm3123_vm11, %v1117_v49, %v1115_v32  ;;  %v1081_v32 = vadd.f32 %v1079_v6, %v1065_v11  ;;  %v3125_v49 = vld [vmem:[#allocation11_spill] sm:$0xff] }
 0x688   :  { %v1120_v60 = vmul.f32 %v1118_v50, %v2329_v24  ;;  %v1121_v4 = vmul.f32 %v1119_v35, %v3124_v56  ;;  %v1110_v7 = vmul.f32 %v3125_v49, %v1104_v28  ;;  %v1111_v47 = vmul.f32 %v3125_v49, %v1105_v21  ;;  %v3138_v28 = vld [vmem:[#allocation22_spill] sm:$0xff]  ;;  %v1195_v50 = vpop.permute.xlu0 %1194  ;;  %v1534_v56 = vld [vmem:[#allocation2 + $0x38] ss:$0 sm:$0xff] }
 0x68a   :  { %v1131_v16 = vpop.permute.xlu1 %1130  ;;  %v1126_v15 = vmul.f32 %v3130_v26, %v1120_v60  ;;  %v1127_v63 = vmul.f32 %v3130_v26, %v1121_v4  ;;  %v1533_v60 = vld [vmem:[#allocation2 + $0x30] ss:$0 sm:$0xff] }
 0x68e   :  { %v1133_v8 = vpop.permute.xlu1 %1132 }
 0x68f   :  { %v1134_v29 = vsel %vm537_vm15, %v1131_v16, %v1133_v8  ;;  %v1135_v55 = vsel %vm537_vm15, %v1133_v8, %v1131_v16  ;;  %vm3129_vm15 = vmmov %vm3128_vm12  ;;  %v1096_v16 = vadd.f32 %v1094_v53, %v1080_v0  ;;  %v1097_v8 = vadd.f32 %v1095_v43, %v1081_v32 }
 0x690   :  { %v1136_v34 = vmul.f32 %v1134_v29, %v3126_v51  ;;  %v1137_v37 = vmul.f32 %v1135_v55, %v3127_v36 }
 0x691   :  { %v1112_v10 = vadd.f32 %v1110_v7, %v1096_v16  ;;  %v1113_v2 = vadd.f32 %v1111_v47, %v1097_v8 }
 0x692   :  { %v1147_v5 = vpop.permute.xlu1 %1146  ;;  %v1143_v12 = vmul.f32 %v2772_v9, %v1137_v37 }
 0x693   :  { %v1128_v44 = vadd.f32 %v1126_v15, %v1112_v10  ;;  %v3140_v10 = vmov 0  }
 0x696   :  { %v1149_v52 = vpop.permute.xlu1 %1148 }
 0x697   :  { %v1150_v27 = vsel %vm3128_vm12, %v1147_v5, %v1149_v52  ;;  %v1151_v24 = vsel %vm3129_vm15, %v1149_v52, %v1147_v5  ;;  %v1142_v5 = vmul.f32 %v2772_v9, %v1136_v34  ;;  %v1129_v52 = vadd.f32 %v1127_v63, %v1113_v2 }
 0x698   :  { %v1152_v14 = vmul.f32 %v1150_v27, %v3133_v58  ;;  %v1153_v54 = vmul.f32 %v1151_v24, %v3134_v59  ;;  %v3139_v59 = vld [vmem:[#allocation10_spill] sm:$0xff]  ;;  %v3141_v2 = vmov 1  }
 0x699   :  { %v1144_v48 = vadd.f32 %v1142_v5, %v1128_v44  ;;  %v1145_v22 = vadd.f32 %v1143_v12, %v1129_v52  ;;  %v3142_v5 = vmov 3   ;;  %v3143_v12 = vmov 4   ;;  %v2895_v44 = vld [vmem:[%s2919_s3] sm:$0xff]  ;;  %s1638_s3 = smov 3  }
 0x69a   :  { %v1163_v38 = vpop.permute.xlu1 %1162  ;;  %v1158_v30 = vmul.f32 %v2774_v18, %v1152_v14  ;;  %v1159_v13 = vmul.f32 %v2774_v18, %v1153_v54 }
 0x69c   :  { %v1160_v35 = vadd.f32 %v1158_v30, %v1144_v48  ;;  %v1161_v18 = vadd.f32 %v1159_v13, %v1145_v22  ;;  %v3146_v30 = vmov 2   ;;  %v3147_v13 = vmov 5  }
 0x69e   :  { %v1165_v3 = vpop.permute.xlu1 %1164 }
 0x69f   :  { %v1166_v45 = vsel %vm3131_vm0, %v1163_v38, %v1165_v3  ;;  %v1167_v62 = vsel %vm3132_vm1, %v1165_v3, %v1163_v38 }
 0x6a0   :  { %v1168_v61 = vmul.f32 %v1166_v45, %v3135_v40  ;;  %v1169_v42 = vmul.f32 %v1167_v62, %v3136_v39  ;;  %v3145_v40 = vmov 7  }
 0x6a2   :  { %v1179_v33 = vpop.permute.xlu1 %1178  ;;  %v1174_v1 = vmul.f32 %v2776_v17, %v1168_v61  ;;  %v1175_v41 = vmul.f32 %v2776_v17, %v1169_v42 }
 0x6a4   :  { %v1176_v29 = vadd.f32 %v1174_v1, %v1160_v35  ;;  %v1177_v55 = vadd.f32 %v1175_v41, %v1161_v18 }
 0x6a6   :  { %v1181_v46 = vpop.permute.xlu1 %1180 }
 0x6a7   :  { %v1182_v31 = vsel %vm612_vm13, %v1179_v33, %v1181_v46  ;;  %v1183_v9 = vsel %vm612_vm13, %v1181_v46, %v1179_v33  ;;  %v1395_v33 = vld [vmem:[%s2918_s2 + $0x8] sm:$0xff]  ;;  %s1637_s2 = smov 6  }
 0x6a8   :  { %v1184_v6 = vmul.f32 %v1182_v31, %v3137_v57  ;;  %v1185_v21 = vmul.f32 %v1183_v9, %v3138_v28 }
 0x6aa   :  { %v1190_v38 = vmul.f32 %v1188_v25, %v1184_v6  ;;  %v1191_v19 = vmul.f32 %v1188_v25, %v1185_v21  ;;  %v1197_v11 = vpop.permute.xlu1 %1196 }
 0x6ab   :  { %v1198_v53 = vsel %vm637_vm14, %v1195_v50, %v1197_v11  ;;  %v1199_v43 = vsel %vm637_vm14, %v1197_v11, %v1195_v50 }
 0x6ac   :  { %v1200_v17 = vmul.f32 %v1533_v60, %v1198_v53  ;;  %v1201_v4 = vmul.f32 %v1534_v56, %v1199_v43  ;;  %v1192_v0 = vadd.f32 %v1190_v38, %v1176_v29  ;;  %v1193_v32 = vadd.f32 %v1191_v19, %v1177_v55 }
 0x6ae   :  { %v1206_v49 = vmul.f32 %v1204_v23, %v1200_v17  ;;  %v1207_v7 = vmul.f32 %v1204_v23, %v1201_v4  ;;  %v3144_v23 = vmov 6  }
 0x6b0   :  { %v1208_v47 = vadd.f32 %v1206_v49, %v1192_v0  ;;  %v1209_v3 = vadd.f32 %v1207_v7, %v1193_v32 }
 0x6b2   :  { %v1210_v25 = vadd.f32 %v1209_v3, %v1208_v47  ;;  %v1213_v51 = vmul.f32 %v1208_v47, %v1208_v47  ;;  %v1214_v34 = vmul.f32 %v1209_v3, %v1209_v3 }
 0x6b4   :  { %1211 = vadd.xlane.f32.xlu0 %v1210_v25  ;;  %v1215_v36 = vadd.f32 %v1214_v34, %v1213_v51 }
 0x6b6   :  { %1216 = vadd.xlane.f32.xlu1 %v1215_v36 }
 0x741   :  { %v1212_v20 = vpop.xlane.xlu0 %1211 }
 0x742   :  { %v1218_v37 = vrot.slane %v1212_v20, 4 }
 0x743   :  { %v1217_v27 = vpop.xlane.xlu1 %1216 }
 0x744   :  { %v1219_v24 = vadd.f32 %v1218_v37, %v1212_v20  ;;  %v1221_v16 = vrot.slane %v1217_v27, 4 }
 0x746   :  { %v1220_v8 = vmul.f32 0.001953125, %v1219_v24  ;;  %v1222_v26 = vadd.f32 %v1221_v16, %v1217_v27 }
 0x748   :  { %v1224_v15 = vmul.f32 %v1220_v8, %v1220_v8  ;;  %v1223_v63 = vmul.f32 0.001953125, %v1222_v26 }
 0x74a   :  { %v1225_v45 = vsub.f32 %v1223_v63, %v1224_v15 }
 0x74c   :  { %v1226_v62 = vadd.f32 1e-05, %v1225_v45 }
 0x74e   :  { %1529 = vrsqrt.f32 %v1226_v62 }
 0x758   :  { %v1530_v58 = vpop.eup %1529 }
 0x759   :  { %1229 = vrot.lane.b32.xlu0 %v1530_v58, %s1615_s22 }
 0x7cb   :  { %v1230_v14 = vpop.permute.xlu0 %1229 }
 0x7cc   :  { %v1232_v54 = vmul.f32 %v1230_v14, %v3139_v59 }
 0x7ce   :  { %1234 = vrot.lane.b32.xlu1 %v1232_v54, %s1612_s20  ;;  %s1558_s20 = scalar_lea.vmem %s1384_s19, 256 }
 0x7cf   :  { %p1559_p8 = scmp.ne.s32.totalorder %s1384_s19, %s1558_s20  ;;  %p1564_p10 = scmp.lt.s32.totalorder %s1558_s20, %s1558_s20 }
 0x7d1   :  { %p1565_p11 = por %p1564_p10, %p1563_p9 }
 0x7d2   :  { %1244 = vperm.xlu1 %1513, %v1232_v54  }
 0x7d3   :  { %p1566_p12 = pnand %p1565_p11, %p1559_p8 }
 0x7d6   :  { %1514 = vset.pattern.permute.xlu1 %v3140_v10 }
 0x7d7   :  { %1264 = vperm.xlu1 %1514, %v1395_v33  }
 0x7db   :  { %1515 = vset.pattern.permute.xlu1 %v3141_v2 }
 0x7dc   :  { %1274 = vperm.xlu1 %1515, %v1395_v33  }
 0x7e0   :  { %1518 = vset.pattern.permute.xlu1 %v3142_v5 }
 0x7e1   :  { %1292 = vperm.xlu1 %1518, %v1395_v33  }
 0x7e5   :  { %1519 = vset.pattern.permute.xlu1 %v3143_v12 }
 0x7e6   :  { %1302 = vperm.xlu1 %1519, %v1395_v33  }
 0x7ea   :  { %1521 = vset.pattern.permute.xlu1 %v3144_v23 }
 0x7eb   :  { %1322 = vperm.xlu1 %1521, %v1395_v33  }
 0x7ef   :  { %1523 = vset.pattern.permute.xlu1 %v3145_v40 }
 0x840   :  { %v1235_v61 = vpop.permute.xlu1 %1234 }
 0x841   :  { %v1237_v39 = vmul.f32 %v1235_v61, %v1220_v8 }
 0x843   :  { %1239 = vrot.lane.b32.xlu0 %v1237_v39, %s1637_s2 }
 0x851   :  { %v1245_v46 = vpop.permute.xlu1 %1244 }
 0x852   :  { %v1247_v31 = vmul.f32 %v1245_v46, %v1208_v47  ;;  %v1248_v9 = vmul.f32 %v1245_v46, %v1209_v3 }
 0x856   :  { %v1265_v48 = vpop.permute.xlu1 %1264 }
 0x85b   :  { %v1275_v22 = vpop.permute.xlu1 %1274 }
 0x860   :  { %v1293_v6 = vpop.permute.xlu1 %1292 }
 0x865   :  { %v1303_v4 = vpop.permute.xlu1 %1302 }
 0x86a   :  { %v1323_v15 = vpop.permute.xlu1 %1322 }
 0x8b5   :  { %v1240_v42 = vpop.permute.xlu0 %1239 }
 0x8b6   :  { %v1242_v52 = vsub.f32 %v2895_v44, %v1240_v42 }
 0x8b8   :  { %1251 = vperm.xlu0 %1516, %v1242_v52  }
 0x8bc   :  { %1517 = vset.pattern.permute.xlu0 %v3146_v30 }
 0x8bd   :  { %1284 = vperm.xlu0 %1517, %v1395_v33  }
 0x8c1   :  { %1520 = vset.pattern.permute.xlu0 %v3147_v13 }
 0x8c2   :  { %1312 = vperm.xlu0 %1520, %v1395_v33  }
 0x8c6   :  { %1522 = vset.pattern.permute.xlu0 %v3142_v5 }
 0x937   :  { %v1252_v1 = vpop.permute.xlu0 %1251 }
 0x938   :  { %v1254_v41 = vadd.f32 %v1252_v1, %v1247_v31  ;;  %v1255_v57 = vadd.f32 %v1252_v1, %v1248_v9 }
 0x93a   :  { %v1256_v28 = vmax.f32 %v1254_v41, 0.0  ;;  %v1257_v21 = vmax.f32 %v1255_v57, 0.0 }
 0x93c   :  { %v1260_v50 = vrot.slane %v1256_v28, 3  ;;  %v1261_v35 = vrot.slane %v1257_v21, 3  ;;  %v1271_v18 = vrot.slane %v1256_v28, 2  ;;  %v1272_v38 = vrot.slane %v1257_v21, 2  ;;  %v1285_v53 = vpop.permute.xlu0 %1284 }
 0x93d   :  { %v1281_v19 = vrot.slane %v1256_v28, 1  ;;  %v1282_v11 = vrot.slane %v1257_v21, 1  ;;  %v1299_v17 = vrot.slane %v1256_v28, 7  ;;  %v1300_v56 = vrot.slane %v1257_v21, 7 }
 0x93e   :  { %v1267_v43 = vmul.f32 %v1265_v48, %v1260_v50  ;;  %v1268_v29 = vmul.f32 %v1265_v48, %v1261_v35  ;;  %v1277_v55 = vmul.f32 %v1275_v22, %v1271_v18  ;;  %v1278_v60 = vmul.f32 %v1275_v22, %v1272_v38 }
 0x93f   :  { %v1287_v49 = vmul.f32 %v1285_v53, %v1281_v19  ;;  %v1288_v7 = vmul.f32 %v1285_v53, %v1282_v11  ;;  %v1295_v25 = vmul.f32 %v1293_v6, %v1256_v28  ;;  %v1296_v51 = vmul.f32 %v1293_v6, %v1257_v21 }
 0x940   :  { %v1279_v0 = vadd.f32 %v1277_v55, %v1267_v43  ;;  %v1280_v32 = vadd.f32 %v1278_v60, %v1268_v29  ;;  %v1305_v34 = vmul.f32 %v1303_v4, %v1299_v17  ;;  %v1306_v36 = vmul.f32 %v1303_v4, %v1300_v56 }
 0x941   :  { %v1319_v20 = vrot.slane %v1256_v28, 5  ;;  %v1320_v37 = vrot.slane %v1257_v21, 5  ;;  %v1313_v27 = vpop.permute.xlu0 %1312  ;;  %v1309_v8 = vrot.slane %v1256_v28, 6  ;;  %v1310_v26 = vrot.slane %v1257_v21, 6 }
 0x942   :  { %v1289_v47 = vadd.f32 %v1287_v49, %v1279_v0  ;;  %v1290_v3 = vadd.f32 %v1288_v7, %v1280_v32 }
 0x943   :  { %v1315_v62 = vmul.f32 %v1313_v27, %v1309_v8  ;;  %v1316_v58 = vmul.f32 %v1313_v27, %v1310_v26  ;;  %v1325_v14 = vmul.f32 %v1323_v15, %v1319_v20  ;;  %v1326_v59 = vmul.f32 %v1323_v15, %v1320_v37 }
 0x944   :  { %v1297_v24 = vadd.f32 %v1295_v25, %v1289_v47  ;;  %v1298_v16 = vadd.f32 %v1296_v51, %v1290_v3 }
 0x946   :  { %v1307_v63 = vadd.f32 %v1305_v34, %v1297_v24  ;;  %v1308_v45 = vadd.f32 %v1306_v36, %v1298_v16 }
 0x948   :  { %v1317_v54 = vadd.f32 %v1315_v62, %v1307_v63  ;;  %v1318_v33 = vadd.f32 %v1316_v58, %v1308_v45 }
 0x94a   :  { %v1327_v10 = vadd.f32 %v1325_v14, %v1317_v54  ;;  %v1328_v2 = vadd.f32 %v1326_v59, %v1318_v33 }
 0x94c   :  { %v1329_v5 = vadd.f32 %v1328_v2, %v1327_v10  ;;  %v1332_v12 = vmul.f32 %v1327_v10, %v1327_v10  ;;  %v1333_v23 = vmul.f32 %v1328_v2, %v1328_v2 }
 0x94e   :  { %1330 = vadd.xlane.f32.xlu1 %v1329_v5  ;;  %v1334_v61 = vadd.f32 %v1333_v23, %v1332_v12 }
 0x950   :  { %1335 = vadd.xlane.f32.xlu0 %v1334_v61 }
 0x9db   :  { %v1331_v39 = vpop.xlane.xlu1 %1330 }
 0x9dc   :  { %v1337_v42 = vrot.slane %v1331_v39, 4 }
 0x9dd   :  { %v1336_v52 = vpop.xlane.xlu0 %1335 }
 0x9de   :  { %v1338_v30 = vadd.f32 %v1337_v42, %v1331_v39  ;;  %v1340_v13 = vrot.slane %v1336_v52, 4 }
 0x9e0   :  { %v1339_v46 = vmul.f32 0.001953125, %v1338_v30  ;;  %v1341_v48 = vadd.f32 %v1340_v13, %v1336_v52 }
 0x9e2   :  { %v1343_v22 = vmul.f32 %v1339_v46, %v1339_v46  ;;  %v1342_v31 = vmul.f32 0.001953125, %v1341_v48 }
 0x9e4   :  { %v1344_v9 = vsub.f32 %v1342_v31, %v1343_v22 }
 0x9e6   :  { %v1345_v1 = vadd.f32 1e-05, %v1344_v9 }
 0x9e8   :  { %1531 = vrsqrt.f32 %v1345_v1 }
 0x9f2   :  { %v1532_v41 = vpop.eup %1531 }
 0x9f3   :  { %1348 = vrot.lane.b32.xlu0 %v1532_v41, %s1638_s3 }
 0xa65   :  { %v1349_v57 = vpop.permute.xlu0 %1348 }
 0xa66   :  { %v1351_v6 = vmul.f32 %v2895_v44, %v1349_v57 }
 0xa68   :  { %1363 = vperm.xlu0 %1522, %v1351_v6   ;;  %1353 = vrot.lane.b32.xlu1 %v1351_v6, %s1639_s16 }
 0xa6c   :  { %1524 = vset.pattern.permute.xlu0 %v3145_v40 }
 0xada   :  { %v1354_v28 = vpop.permute.xlu1 %1353 }
 0xadb   :  { %v1356_v21 = vmul.f32 %v1354_v28, %v1339_v46 }
 0xadd   :  { %1358 = vrot.lane.b32.xlu1 %v1356_v21, %s1640_s17 }
 0xae7   :  { %v1364_v18 = vpop.permute.xlu0 %1363 }
 0xae8   :  { %v1366_v38 = vmul.f32 %v1364_v18, %v1327_v10  ;;  %v1367_v19 = vmul.f32 %v1364_v18, %v1328_v2 }
 0xb4f   :  { %v1359_v50 = vpop.permute.xlu1 %1358 }
 0xb50   :  { %v1361_v35 = vsub.f32 %v2895_v44, %v1359_v50 }
 0xb52   :  { %1370 = vperm.xlu1 %1523, %v1361_v35  }
 0xbd1   :  { %v1371_v11 = vpop.permute.xlu1 %1370 }
 0xbd2   :  { %v1373_v53 = vadd.f32 %v1371_v11, %v1366_v38  ;;  %v1374_v43 = vadd.f32 %v1371_v11, %v1367_v19 }
 0xbd4   :  { %1375 = vst [vmem:[#allocation5] sm:$0xff] %v1373_v53  ;;  %1376 = vst [vmem:[#allocation5 + $0x8] sm:$0xff] %v1374_v43 }
 0xbd5   :  { %1569 = shalt.err (!%p1566_p12)
}
 0xbd6   :  { %s1570_s23 = scalar_lea.hbm %s2921_s5, 256 }
 0xbd7   :  { %p1571_p13 = scmp.ne.s32.totalorder %s2921_s5, %s1570_s23  ;;  %p1574_p0 = scmp.lt.u32.totalorder %s1570_s23, %s2921_s5 }
 0xbd9   :  { %p1576_p1 = pnand %p1574_p0, %p1571_p13 }
 0xbdb   :  { %1579 = shalt.err (!%p1576_p1)
}
 0xbdc   :  { %1386 = dma.vmem_to_hbm [thread:$0]  %s1384_s19, 256, %s2921_s5, [#allocation4]  }
 0xbdd   :  { %1582 = dma.done.wait [#allocation4], 256  }
 0xbde   :  { %1583 = vsyncadd [#allocation4], 4294967040 }
 0xbdf   :  { %1390 = vsyncpa [#allocation3], 1 }
 0xbe0   :  { %1391 = vsyncpa [#allocation4], 1 }

</bundles_post_ra>
